<compile_context>
chip_gen: v5e
topology: v5e:2x2
jax: 0.10.0
libtpu: 0.0.40
codegen_flags: <defaults>
</compile_context>

<pallas_src>
import jax
import jax.numpy as jnp
from jax import lax
from jax.experimental import pallas as pl
from jax.experimental.pallas import tpu as pltpu


# ---------------------------------------------------------------------------
# Static geometry for the (N, 3, 4, 4, 4) problem in the PyTorch spec.
# ---------------------------------------------------------------------------
CIN = 3
D = H = W = 4
DP, HP, WP = D + 2, H + 2, W + 2          # zero-padded spatial grid (pad = 1)
P = DP * HP * WP                          # 216 flattened padded positions
CL = 128                                  # lane-padded channel / K width
K1 = 27 * CIN                             # 81 packed Conv3d tap-lanes
IND = K1                                  # lane 81: interior indicator (BN bias)
HALO2 = 8                                 # stage-2 halo rows (max |shift| = 7)
PEXT2 = P + 2 * HALO2                     # 232 rows in the halo-extended frame

# Row shifts (flattened padded frame) for the 9 Conv2d taps, t = kh*3 + kw.
SHIFTS2 = [(kh - 1) * WP + (kw - 1) for kh in range(3) for kw in range(3)]


# ---------------------------------------------------------------------------
# Fused Pallas kernel: Conv3d+BN3d -> Conv2d+BN2d -> ReLU, two MXU matmuls.
# ---------------------------------------------------------------------------
def _fused_conv_bn_relu_kernel(xpk_ref, w1_ref, w2_ref, sh2_ref, o_ref, y_ext):
    # xpk_ref: (P, CL)  tap-packed, interior-masked input (lanes 0..80 = taps,
    #                   lane 81 = interior indicator, rest zero)
    # w1_ref:  (CL, CL) packed Conv3d weight * BN3d scale; row 81 = BN3d shift
    # w2_ref:  (CL, CL) packed Conv2d weight * BN2d scale (both rotate
    #                   conventions filled); cols 3..127 zero
    # sh2_ref: (1, CL)  BN2d folded shift (lanes 0..2)
    # o_ref:   (P, CL)  output slab (valid data at interior rows, lanes 0..2)
    # y_ext:   (PEXT2, CL) VMEM scratch: halo-extended stage-1 activation

    # ---- stage 1: Conv3d + BN3d (+ interior mask) as ONE MXU matmul --------
    # ybn is exactly zero at non-interior rows and at lanes 3..127.
    ybn = jnp.dot(xpk_ref[...], w1_ref[...], preferred_element_type=jnp.float32)

    # ---- stage 2: lane-pack the 9 Conv2d taps, ONE matmul, BN shift, ReLU --
    y_ext[pl.ds(0, HALO2), :] = jnp.zeros((HALO2, CL), jnp.float32)
    y_ext[pl.ds(HALO2, P), :] = ybn
    y_ext[pl.ds(HALO2 + P, HALO2), :] = jnp.zeros((HALO2, CL), jnp.float32)

    # Tap t contributes its 3 channels at lane group 3t (rotation of the
    # all-zero-elsewhere ybn).  Row shifts come from the halo-window reads.
    packed = y_ext[pl.ds(HALO2 + SHIFTS2[0], P), :]           # tap 0 -> lanes 0..2
    for t in range(1, 9):
        ytap = y_ext[pl.ds(HALO2 + SHIFTS2[t], P), :]
        packed = packed + pltpu.roll(ytap, shift=3 * t, axis=1)

    z = jnp.dot(packed, w2_ref[...], preferred_element_type=jnp.float32)
    z = z + sh2_ref[...]
    o_ref[...] = jnp.maximum(z, 0.0)


# ---------------------------------------------------------------------------
# Parameter packing (done once, outside the jitted forward)
# ---------------------------------------------------------------------------
def pack_params(params, eps=1e-5):
    (w3, b3, (g1, be1, m1, v1), w2, b2, (g2, be2, m2, v2)) = params

    # Folded BatchNorm (eval mode): y = conv * scale + shift.
    s1 = g1 / jnp.sqrt(v1 + eps)
    sh1 = (b3 - m1) * s1 + be1
    s2 = g2 / jnp.sqrt(v2 + eps)
    sh2 = (b2 - m2) * s2 + be2

    # Stage-1 packed weight: row (3t + ci) , col co = w3[co,ci,kd,kh,kw]*s1[co]
    # with t = kd*9 + kh*3 + kw; row 81 (indicator lane) carries the BN shift.
    w3_r = jnp.transpose(w3, (2, 3, 4, 1, 0)).reshape(K1, CIN)     # [(t,ci), co]
    w1p = jnp.zeros((CL, CL), jnp.float32)
    w1p = w1p.at[:K1, :CIN].set(w3_r * s1[None, :])
    w1p = w1p.at[IND, :CIN].set(sh1)

    # Stage-2 packed weight: row (3t + ci), col co = w2[co,ci,kh,kw]*s2[co].
    # Also fill rows (128 - 3t + ci) for t>=1 so the kernel is correct under
    # either lane-rotation convention (those rows only meet all-zero lanes).
    w2_r = jnp.transpose(w2, (2, 3, 1, 0)).reshape(9, CIN, CIN)    # [t, ci, co]
    w2_s = w2_r * s2[None, None, :]
    w2p = jnp.zeros((CL, CL), jnp.float32)
    w2p = w2p.at[:9 * CIN, :CIN].set(w2_s.reshape(9 * CIN, CIN))
    for t in range(1, 9):
        w2p = w2p.at[CL - 3 * t: CL - 3 * t + CIN, :CIN].set(w2_s[t])

    shift2 = jnp.zeros((1, CL), jnp.float32).at[0, :CIN].set(sh2)
    return w1p, w2p, shift2


# ---------------------------------------------------------------------------
# Input packing: im2col-style tap packing along lanes (tiny data, wrapper-side)
# ---------------------------------------------------------------------------
def pack_input(x):
    N = x.shape[0]
    xcl = jnp.transpose(x, (0, 2, 3, 4, 1))                        # (N,4,4,4,3)
    xpp = jnp.pad(xcl, ((0, 0), (2, 2), (2, 2), (2, 2), (0, 0)))   # (N,8,8,8,3)
    parts = [xpp[:, kd:kd + DP, kh:kh + HP, kw:kw + WP, :]
             for kd in range(3) for kh in range(3) for kw in range(3)]
    patches = jnp.concatenate(parts, axis=-1)                      # (N,6,6,6,81)

    # Interior indicator on the padded 6x6x6 grid: masks the packed rows
    # (this is exactly Conv2d's zero padding) and feeds the stage-1 BN shift.
    r = jnp.arange(DP)
    in1 = ((r >= 1) & (r <= D)).astype(jnp.float32)
    ind = in1[:, None, None] * in1[None, :, None] * in1[None, None, :]  # (6,6,6)
    indb = jnp.broadcast_to(ind[None, :, :, :, None], (N, DP, HP, WP, 1))

    xpk = jnp.concatenate([patches * ind[None, :, :, :, None], indb], axis=-1)
    xpk = jnp.pad(xpk, ((0, 0), (0, 0), (0, 0), (0, 0), (0, CL - (K1 + 1))))
    return xpk.reshape(N * P, CL)


# ---------------------------------------------------------------------------
# Model forward (single fused Pallas kernel + thin layout glue)
# ---------------------------------------------------------------------------
def model_forward(x, packed):
    w1p, w2p, shift2 = packed
    N = x.shape[0]
    assert x.shape[1:] == (CIN, D, H, W), x.shape

    xpk = pack_input(x)                                            # (N*P, CL)

    out = pl.pallas_call(
        _fused_conv_bn_relu_kernel,
        out_shape=jax.ShapeDtypeStruct((N * P, CL), jnp.float32),
        grid=(N,),
        in_specs=[
            pl.BlockSpec((P, CL), lambda n: (n, 0)),
            pl.BlockSpec((CL, CL), lambda n: (0, 0)),
            pl.BlockSpec((CL, CL), lambda n: (0, 0)),
            pl.BlockSpec((1, CL), lambda n: (0, 0)),
        ],
        out_specs=pl.BlockSpec((P, CL), lambda n: (n, 0)),
        scratch_shapes=[pltpu.VMEM((PEXT2, CL), jnp.float32)],
        compiler_params=pltpu.CompilerParams(
            dimension_semantics=("parallel",)),
    )(xpk, w1p, w2p, shift2)

    # (N*216, 128) -> keep interior positions / real channels -> NCDHW.
    out = out.reshape(N, DP, HP, WP, CL)[:, 1:D + 1, 1:H + 1, 1:W + 1, :CIN]
    return jnp.transpose(out, (0, 4, 1, 2, 3))


# ---------------------------------------------------------------------------
# Pure-JAX reference (lax conv) for the correctness check
# ---------------------------------------------------------------------------
def ref_forward(x, params, eps=1e-5):
    (w3, b3, (g1, be1, m1, v1), w2, b2, (g2, be2, m2, v2)) = params
    y = lax.conv_general_dilated(
        x, w3, window_strides=(1, 1, 1),
        padding=((1, 1), (1, 1), (1, 1)),
        dimension_numbers=("NCDHW", "OIDHW", "NCDHW"),
        precision=lax.Precision.HIGHEST)
    y = y + b3[None, :, None, None, None]
    y = (g1[None, :, None, None, None]
         * (y - m1[None, :, None, None, None])
         / jnp.sqrt(v1[None, :, None, None, None] + eps)
         + be1[None, :, None, None, None])
    N, C, Dd, Hh, Ww = y.shape
    y2 = jnp.transpose(y, (0, 2, 1, 3, 4)).reshape(N * Dd, C, Hh, Ww)
    z = lax.conv_general_dilated(
        y2, w2, window_strides=(1, 1),
        padding=((1, 1), (1, 1)),
        dimension_numbers=("NCHW", "OIHW", "NCHW"),
        precision=lax.Precision.HIGHEST)
    z = z + b2[None, :, None, None]
    z = (g2[None, :, None, None]
         * (z - m2[None, :, None, None])
         / jnp.sqrt(v2[None, :, None, None] + eps)
         + be2[None, :, None, None])
    z = jnp.maximum(z, 0.0)
    z = z.reshape(N, Dd, -1, Hh, Ww)
    return jnp.transpose(z, (0, 2, 1, 3, 4))


# ---------------------------------------------------------------------------
# Main
# ---------------------------------------------------------------------------
if __name__ == "__main__":
    key = jax.random.PRNGKey(0)
    ks = jax.random.split(key, 12)

    N = 2  # spec input is (1,3,4,4,4); use batch 2 to exercise the batch grid
    x = jax.random.normal(ks[0], (N, CIN, D, H, W), dtype=jnp.float32)

    # Conv3d(3, 3, k=3): weight (O, I, kD, kH, kW), bias (O,)
    w3 = jax.random.normal(ks[1], (3, 3, 3, 3, 3), dtype=jnp.float32) * 0.2
    b3 = jax.random.normal(ks[2], (3,), dtype=jnp.float32) * 0.1
    # BatchNorm3d(3) — eval-mode running stats (deterministic, non-trivial)
    bn3 = (1.0 + 0.1 * jax.random.normal(ks[3], (3,), dtype=jnp.float32),   # gamma
           0.1 * jax.random.normal(ks[4], (3,), dtype=jnp.float32),         # beta
           0.05 * jax.random.normal(ks[5], (3,), dtype=jnp.float32),        # mean
           1.0 + 0.1 * jnp.abs(jax.random.normal(ks[6], (3,), dtype=jnp.float32)))

    # Conv2d(3, 3, k=3): weight (O, I, kH, kW), bias (O,)
    w2 = jax.random.normal(ks[7], (3, 3, 3, 3), dtype=jnp.float32) * 0.2
    b2 = jax.random.normal(ks[8], (3,), dtype=jnp.float32) * 0.1
    # BatchNorm2d(3)
    bn2 = (1.0 + 0.1 * jax.random.normal(ks[9], (3,), dtype=jnp.float32),
           0.1 * jax.random.normal(ks[10], (3,), dtype=jnp.float32),
           0.05 * jax.random.normal(ks[11], (3,), dtype=jnp.float32),
           jnp.ones((3,), dtype=jnp.float32))

    params = (w3, b3, bn3, w2, b2, bn2)
    packed = pack_params(params)

    fwd = jax.jit(model_forward)
    out = jax.block_until_ready(fwd(x, packed))

    ref = ref_forward(x, params)
    assert out.shape == (N, CIN, D, H, W), out.shape
    err = float(jnp.max(jnp.abs(out - ref)))
    assert err < 1e-3, err

    print("KERNEL_OK")
</pallas_src>

<mosaic_0001>
module attributes {stable_mosaic.version = 11 : i64} {
  func.func @_fused_conv_bn_relu_kernel(%arg0: i32, %arg1: memref<216x128xf32, #tpu.memory_space<vmem>>, %arg2: memref<128x128xf32, #tpu.memory_space<vmem>>, %arg3: memref<128x128xf32, #tpu.memory_space<vmem>>, %arg4: memref<1x128xf32, #tpu.memory_space<vmem>>, %arg5: memref<216x128xf32, #tpu.memory_space<vmem>>, %arg6: memref<232x128xf32, #tpu.memory_space<vmem>>) attributes {dimension_semantics = [#tpu.dimension_semantics<parallel>], iteration_bounds = array<i64: 2>, scalar_prefetch = 0 : i64, scratch_operands = 1 : i64, tpu.core_type = #tpu.core_type<tc>, window_params = [{transform_indices = @transform_0, window_bounds = array<i64: 216, 128>}, {pipeline_mode = #tpu.pipeline_mode<synchronous>, transform_indices = @transform_1, window_bounds = array<i64: 128, 128>}, {pipeline_mode = #tpu.pipeline_mode<synchronous>, transform_indices = @transform_2, window_bounds = array<i64: 128, 128>}, {pipeline_mode = #tpu.pipeline_mode<synchronous>, transform_indices = @transform_3, window_bounds = array<i64: 1, 128>}, {transform_indices = @transform_4, window_bounds = array<i64: 216, 128>}]} {
    %c0 = arith.constant 0 : index
    %c0_0 = arith.constant 0 : index
    %0 = vector.load %arg1[%c0, %c0_0] : memref<216x128xf32, #tpu.memory_space<vmem>>, vector<216x128xf32>
    %c0_1 = arith.constant 0 : index
    %c0_2 = arith.constant 0 : index
    %1 = vector.load %arg2[%c0_1, %c0_2] : memref<128x128xf32, #tpu.memory_space<vmem>>, vector<128x128xf32>
    %cst = arith.constant dense<0.000000e+00> : vector<216x128xf32>
    %2 = tpu.matmul %0, %1, %cst {dimension_numbers = #tpu.dot_dimension_numbers<[1], [0], [0], [1], [0, 0, 1, 1], [], []>} : vector<216x128xf32>, vector<128x128xf32>, vector<216x128xf32> -> vector<216x128xf32>
    %cst_3 = arith.constant 0.000000e+00 : f32
    %3 = vector.broadcast %cst_3 : f32 to vector<8x128xf32>
    %c0_4 = arith.constant 0 : index
    %c0_5 = arith.constant 0 : index
    %4 = vector.load %arg6[%c0_4, %c0_5] : memref<232x128xf32, #tpu.memory_space<vmem>>, vector<8x128xf32>
    tpu.vector_store %arg6[%c0_4, %c0_5], %3 {strides = array<i32>} : memref<232x128xf32, #tpu.memory_space<vmem>>, vector<8x128xf32>,
    %c8 = arith.constant 8 : index
    %c0_6 = arith.constant 0 : index
    %5 = vector.load %arg6[%c8, %c0_6] : memref<232x128xf32, #tpu.memory_space<vmem>>, vector<216x128xf32>
    tpu.vector_store %arg6[%c8, %c0_6], %2 {strides = array<i32>} : memref<232x128xf32, #tpu.memory_space<vmem>>, vector<216x128xf32>,
    %cst_7 = arith.constant 0.000000e+00 : f32
    %6 = vector.broadcast %cst_7 : f32 to vector<8x128xf32>
    %c224 = arith.constant 224 : index
    %c0_8 = arith.constant 0 : index
    %7 = vector.load %arg6[%c224, %c0_8] : memref<232x128xf32, #tpu.memory_space<vmem>>, vector<8x128xf32>
    tpu.vector_store %arg6[%c224, %c0_8], %6 {strides = array<i32>} : memref<232x128xf32, #tpu.memory_space<vmem>>, vector<8x128xf32>,
    %c1 = arith.constant 1 : index
    %c0_9 = arith.constant 0 : index
    %8 = vector.load %arg6[%c1, %c0_9] : memref<232x128xf32, #tpu.memory_space<vmem>>, vector<216x128xf32>
    %c2 = arith.constant 2 : index
    %c0_10 = arith.constant 0 : index
    %9 = vector.load %arg6[%c2, %c0_10] : memref<232x128xf32, #tpu.memory_space<vmem>>, vector<216x128xf32>
    %c3_i32 = arith.constant 3 : i32
    %10 = tpu.dynamic_rotate %9 by %c3_i32 dim 1 : vector<216x128xf32>, i32 -> vector<216x128xf32>
    %11 = arith.addf %8, %10 : vector<216x128xf32>
    %c3 = arith.constant 3 : index
    %c0_11 = arith.constant 0 : index
    %12 = vector.load %arg6[%c3, %c0_11] : memref<232x128xf32, #tpu.memory_space<vmem>>, vector<216x128xf32>
    %c6_i32 = arith.constant 6 : i32
    %13 = tpu.dynamic_rotate %12 by %c6_i32 dim 1 : vector<216x128xf32>, i32 -> vector<216x128xf32>
    %14 = arith.addf %11, %13 : vector<216x128xf32>
    %c7 = arith.constant 7 : index
    %c0_12 = arith.constant 0 : index
    %15 = vector.load %arg6[%c7, %c0_12] : memref<232x128xf32, #tpu.memory_space<vmem>>, vector<216x128xf32>
    %c9_i32 = arith.constant 9 : i32
    %16 = tpu.dynamic_rotate %15 by %c9_i32 dim 1 : vector<216x128xf32>, i32 -> vector<216x128xf32>
    %17 = arith.addf %14, %16 : vector<216x128xf32>
    %c8_13 = arith.constant 8 : index
    %c0_14 = arith.constant 0 : index
    %18 = vector.load %arg6[%c8_13, %c0_14] : memref<232x128xf32, #tpu.memory_space<vmem>>, vector<216x128xf32>
    %c12_i32 = arith.constant 12 : i32
    %19 = tpu.dynamic_rotate %18 by %c12_i32 dim 1 : vector<216x128xf32>, i32 -> vector<216x128xf32>
    %20 = arith.addf %17, %19 : vector<216x128xf32>
    %c9 = arith.constant 9 : index
    %c0_15 = arith.constant 0 : index
    %21 = vector.load %arg6[%c9, %c0_15] : memref<232x128xf32, #tpu.memory_space<vmem>>, vector<216x128xf32>
    %c15_i32 = arith.constant 15 : i32
    %22 = tpu.dynamic_rotate %21 by %c15_i32 dim 1 : vector<216x128xf32>, i32 -> vector<216x128xf32>
    %23 = arith.addf %20, %22 : vector<216x128xf32>
    %c13 = arith.constant 13 : index
    %c0_16 = arith.constant 0 : index
    %24 = vector.load %arg6[%c13, %c0_16] : memref<232x128xf32, #tpu.memory_space<vmem>>, vector<216x128xf32>
    %c18_i32 = arith.constant 18 : i32
    %25 = tpu.dynamic_rotate %24 by %c18_i32 dim 1 : vector<216x128xf32>, i32 -> vector<216x128xf32>
    %26 = arith.addf %23, %25 : vector<216x128xf32>
    %c14 = arith.constant 14 : index
    %c0_17 = arith.constant 0 : index
    %27 = vector.load %arg6[%c14, %c0_17] : memref<232x128xf32, #tpu.memory_space<vmem>>, vector<216x128xf32>
    %c21_i32 = arith.constant 21 : i32
    %28 = tpu.dynamic_rotate %27 by %c21_i32 dim 1 : vector<216x128xf32>, i32 -> vector<216x128xf32>
    %29 = arith.addf %26, %28 : vector<216x128xf32>
    %c15 = arith.constant 15 : index
    %c0_18 = arith.constant 0 : index
    %30 = vector.load %arg6[%c15, %c0_18] : memref<232x128xf32, #tpu.memory_space<vmem>>, vector<216x128xf32>
    %c24_i32 = arith.constant 24 : i32
    %31 = tpu.dynamic_rotate %30 by %c24_i32 dim 1 : vector<216x128xf32>, i32 -> vector<216x128xf32>
    %32 = arith.addf %29, %31 : vector<216x128xf32>
    %c0_19 = arith.constant 0 : index
    %c0_20 = arith.constant 0 : index
    %33 = vector.load %arg3[%c0_19, %c0_20] : memref<128x128xf32, #tpu.memory_space<vmem>>, vector<128x128xf32>
    %cst_21 = arith.constant dense<0.000000e+00> : vector<216x128xf32>
    %34 = tpu.matmul %32, %33, %cst_21 {dimension_numbers = #tpu.dot_dimension_numbers<[1], [0], [0], [1], [0, 0, 1, 1], [], []>} : vector<216x128xf32>, vector<128x128xf32>, vector<216x128xf32> -> vector<216x128xf32>
    %c0_22 = arith.constant 0 : index
    %c0_23 = arith.constant 0 : index
    %35 = vector.load %arg4[%c0_22, %c0_23] : memref<1x128xf32, #tpu.memory_space<vmem>>, vector<1x128xf32>
    %36 = vector.broadcast %35 : vector<1x128xf32> to vector<216x128xf32>
    %37 = arith.addf %34, %36 : vector<216x128xf32>
    %cst_24 = arith.constant 0.000000e+00 : f32
    %38 = vector.broadcast %cst_24 : f32 to vector<216x128xf32>
    %39 = arith.maximumf %37, %38 : vector<216x128xf32>
    %c0_25 = arith.constant 0 : index
    %c0_26 = arith.constant 0 : index
    %40 = vector.load %arg5[%c0_25, %c0_26] : memref<216x128xf32, #tpu.memory_space<vmem>>, vector<216x128xf32>
    tpu.vector_store %arg5[%c0_25, %c0_26], %39 {strides = array<i32>} : memref<216x128xf32, #tpu.memory_space<vmem>>, vector<216x128xf32>,
    return
  }
  func.func @transform_0(%arg0: i32) -> (i32, i32) {
    %c0_i32 = arith.constant 0 : i32
    %c0_i32_0 = arith.constant 0 : i32
    return %arg0, %c0_i32 : i32, i32
  }
  func.func @transform_1(%arg0: i32) -> (i32, i32) {
    %c0_i32 = arith.constant 0 : i32
    %c0_i32_0 = arith.constant 0 : i32
    %c0_i32_1 = arith.constant 0 : i32
    return %c0_i32, %c0_i32_0 : i32, i32
  }
  func.func @transform_2(%arg0: i32) -> (i32, i32) {
    %c0_i32 = arith.constant 0 : i32
    %c0_i32_0 = arith.constant 0 : i32
    %c0_i32_1 = arith.constant 0 : i32
    return %c0_i32, %c0_i32_0 : i32, i32
  }
  func.func @transform_3(%arg0: i32) -> (i32, i32) {
    %c0_i32 = arith.constant 0 : i32
    %c0_i32_0 = arith.constant 0 : i32
    %c0_i32_1 = arith.constant 0 : i32
    return %c0_i32, %c0_i32_0 : i32, i32
  }
  func.func @transform_4(%arg0: i32) -> (i32, i32) {
    %c0_i32 = arith.constant 0 : i32
    %c0_i32_0 = arith.constant 0 : i32
    return %arg0, %c0_i32 : i32, i32
  }
}

</mosaic_0001>

<bundles_post_ra>
// kernel: model_forward.1
= control target key start
LH: loop header
LB: loop body
LE: loop exit
PB: predicated region body
PF: predicated region fallthrough
CT: control target
= control target key end

     0   :  { %s1541_s15 = smov 0   ;;  %s2525_s0 = inlined_call_operand.vmem [shape: f32[432,128], index: 0, kind: input, shape index: {}]   ;;  %s2526_s1 = inlined_call_operand.vmem [shape: f32[128,128], index: 1, kind: input, shape index: {}]   ;;  %s2527_s2 = inlined_call_operand.vmem [shape: f32[128,128], index: 2, kind: input, shape index: {}]   ;;  %s2528_s3 = inlined_call_operand.vmem [shape: f32[1,128], index: 3, kind: input, shape index: {}]   ;;  %s2529_s4 = inlined_call_operand.vmem [shape: f32[432,128], index: 4, kind: output, shape index: {}]  }
   0x1 LB: > { %s1438_s16 = sadd.s32 4294967295, %s1505_s15   ;;  %p1442_p0 = scmp.ge.s32.totalorder %s1505_s15, 1  ;;  %s1505_s15 = sphi %s1541_s15, %s14_s15  }
   0x2   : > { %p163_p1 = scmp.lt.s32.totalorder %s1505_s15, 3 }
   0x4   : > { %p164_p2 = pnand %p1442_p0, %p163_p1 }
   0x6   : > { %167 = sbr.rel (%p164_p2) target bundleno = 997 (0x3e5), region = 36 }
   0xb   : > { %v243_v0 = vld [vmem:[%s2526_s1 + $0x78] sm:$0xff]  ;;  %v242_v1 = vld [vmem:[%s2526_s1 + $0x70] sm:$0xff]  ;;  %v241_v2 = vld [vmem:[%s2526_s1 + $0x68] sm:$0xff]  ;;  %s189_s5 = smul.u32 27, %s1438_s16  ;;  %v1507_v37 = vmov 0.0   ;;  %s1508_s29 = smov 12  }
   0xc   : > { %244 = vmatpush.msra.mxu0 %v243_v0  ;;  %1447 = vmatpush.msra.mxu2 %v243_v0  ;;  %v240_v3 = vld [vmem:[%s2526_s1 + $0x60] sm:$0xff]  ;;  %v239_v4 = vld [vmem:[%s2526_s1 + $0x58] sm:$0xff]  ;;  %v238_v5 = vld [vmem:[%s2526_s1 + $0x50] sm:$0xff]  ;;  %342 = vst [vmem:[#allocation2] sm:$0xff] %v1507_v37  ;;  %s1509_s30 = smov 3   ;;  %s1510_s6 = smov 6  }
   0xd   : > { %v237_v6 = vld [vmem:[%s2526_s1 + $0x48] sm:$0xff]  ;;  %v236_v7 = vld [vmem:[%s2526_s1 + $0x40] sm:$0xff]  ;;  %v235_v8 = vld [vmem:[%s2526_s1 + $0x38] sm:$0xff]  ;;  %p190_p3 = scmp.lt.s32.totalorder %s189_s5, 53  ;;  %370 = vst [vmem:[#allocation2 + $0xe0] sm:$0xff] %v1507_v37  ;;  %s1511_s7 = smov 9  }
   0xe   : > { %245 = vmatpush.msra.mxu0 %v242_v1  ;;  %1448 = vmatpush.msra.mxu2 %v242_v1  ;;  %v234_v9 = vld [vmem:[%s2526_s1 + $0x30] sm:$0xff]  ;;  %v233_v10 = vld [vmem:[%s2526_s1 + $0x28] sm:$0xff]  ;;  %v232_v11 = vld [vmem:[%s2526_s1 + $0x20] sm:$0xff]  ;;  %s1512_s8 = smov 15   ;;  %s1513_s9 = smov 18  }
   0xf   : > { %s2673_s5 = smov (!%p190_p3, %s189_s5), 53  ;;  %v231_v12 = vld [vmem:[%s2526_s1 + $0x18] sm:$0xff]  ;;  %v230_v13 = vld [vmem:[%s2526_s1 + $0x10] sm:$0xff]  ;;  %v229_v14 = vld [vmem:[%s2526_s1 + $0x8] sm:$0xff]  ;;  %s1514_s10 = smov 21  }
  0x10   : > { %246 = vmatpush.msra.mxu0 %v241_v2  ;;  %1449 = vmatpush.msra.mxu2 %v241_v2  ;;  %s1443_s19 = sshll.u32 %s2673_s5, 3  ;;  %v228_v15 = vld [vmem:[%s2526_s1] sm:$0xff]  ;;  %s1515_s11 = smov 24  }
  0x11   : > { %s1602_s26 = scalar_lea.vmem %s2525_s0, %s1443_s19  ;;  %s2451_s28 = scalar_lea.vmem %s2529_s4, %s1443_s19 }
  0x12   : > { %247 = vmatpush.msra.mxu0 %v240_v3  ;;  %1450 = vmatpush.msra.mxu2 %v240_v3  ;;  %v201_v16 = vld [vmem:[%s1602_s26] sm:$0xff]  ;;  %v214_v17 = vld [vmem:[%s1602_s26 + $0x68] sm:$0xff]  ;;  %v215_v19 = vld [vmem:[%s1602_s26 + $0x70] sm:$0xff] }
  0x13   : > { %v202_v18 = vld [vmem:[%s1602_s26 + $0x8] sm:$0xff]  ;;  %v203_v20 = vld [vmem:[%s1602_s26 + $0x10] sm:$0xff]  ;;  %v216_v21 = vld [vmem:[%s1602_s26 + $0x78] sm:$0xff] }
  0x14   : > { %248 = vmatpush.msra.mxu0 %v239_v4  ;;  %1451 = vmatpush.msra.mxu2 %v239_v4  ;;  %v204_v22 = vld [vmem:[%s1602_s26 + $0x18] sm:$0xff]  ;;  %v217_v23 = vld [vmem:[%s1602_s26 + $0x80] sm:$0xff]  ;;  %v218_v25 = vld [vmem:[%s1602_s26 + $0x88] sm:$0xff] }
  0x15   : > { %v205_v24 = vld [vmem:[%s1602_s26 + $0x20] sm:$0xff]  ;;  %v206_v26 = vld [vmem:[%s1602_s26 + $0x28] sm:$0xff]  ;;  %v207_v27 = vld [vmem:[%s1602_s26 + $0x30] sm:$0xff] }
  0x16   : > { %249 = vmatpush.msra.mxu0 %v238_v5  ;;  %1452 = vmatpush.msra.mxu2 %v238_v5  ;;  %v219_v28 = vld [vmem:[%s1602_s26 + $0x90] sm:$0xff]  ;;  %v208_v29 = vld [vmem:[%s1602_s26 + $0x38] sm:$0xff]  ;;  %v209_v31 = vld [vmem:[%s1602_s26 + $0x40] sm:$0xff] }
  0x17   : > { %v220_v30 = vld [vmem:[%s1602_s26 + $0x98] sm:$0xff]  ;;  %v221_v32 = vld [vmem:[%s1602_s26 + $0xa0] sm:$0xff]  ;;  %v210_v33 = vld [vmem:[%s1602_s26 + $0x48] sm:$0xff] }
  0x18   : > { %250 = vmatpush.msra.mxu0 %v237_v6  ;;  %1453 = vmatpush.msra.mxu2 %v237_v6  ;;  %v211_v34 = vld [vmem:[%s1602_s26 + $0x50] sm:$0xff]  ;;  %v212_v35 = vld [vmem:[%s1602_s26 + $0x58] sm:$0xff]  ;;  %v213_v36 = vld [vmem:[%s1602_s26 + $0x60] sm:$0xff] }
  0x19   : > { %v222_v38 = vld [vmem:[%s1602_s26 + $0xa8] sm:$0xff]  ;;  %v223_v39 = vld [vmem:[%s1602_s26 + $0xb0] sm:$0xff]  ;;  %v224_v40 = vld [vmem:[%s1602_s26 + $0xb8] sm:$0xff] }
  0x1a   : > { %251 = vmatpush.msra.mxu0 %v236_v7  ;;  %1454 = vmatpush.msra.mxu2 %v236_v7  ;;  %v225_v57 = vld [vmem:[%s1602_s26 + $0xc0] sm:$0xff]  ;;  %v226_v63 = vld [vmem:[%s1602_s26 + $0xc8] sm:$0xff] }
  0x1c   : > { %252 = vmatpush.msra.mxu0 %v235_v8  ;;  %1455 = vmatpush.msra.mxu2 %v235_v8 }
  0x1e   : > { %253 = vmatpush.msra.mxu0 %v234_v9  ;;  %1456 = vmatpush.msra.mxu2 %v234_v9 }
  0x20   : > { %254 = vmatpush.msra.mxu0 %v233_v10  ;;  %1457 = vmatpush.msra.mxu2 %v233_v10 }
  0x22   : > { %255 = vmatpush.msra.mxu0 %v232_v11  ;;  %1458 = vmatpush.msra.mxu2 %v232_v11 }
  0x24   : > { %256 = vmatpush.msra.mxu0 %v231_v12  ;;  %1459 = vmatpush.msra.mxu2 %v231_v12 }
  0x26   : > { %257 = vmatpush.msra.mxu0 %v230_v13  ;;  %1460 = vmatpush.msra.mxu2 %v230_v13 }
  0x28   : > { %258 = vmatpush.msra.mxu0 %v229_v14  ;;  %1461 = vmatpush.msra.mxu2 %v229_v14 }
  0x2a   : > { %259 = vmatpush.msra.mxu0 %v228_v15  ;;  %1462 = vmatpush.msra.mxu2 %v228_v15 }
  0x2b   : > { %260 = vmatmul.f32.vlgmr.msra.gmra.mxu0 %v201_v16  ;;  %299 = vmatmul.f32.vlgmr.msra.gmra.mxu2 %v214_v17 }
  0x33   : > { %263 = vmatmul.f32.gmra.mxu0 %v202_v18  ;;  %302 = vmatmul.f32.gmra.mxu2 %v215_v19 }
  0x3b   : > { %266 = vmatmul.f32.gmra.mxu0 %v203_v20  ;;  %305 = vmatmul.f32.gmra.mxu2 %v216_v21  ;;  %v227_v20 = vld [vmem:[%s1602_s26 + $0xd0] sm:$0xff] }
  0x43   : > { %269 = vmatmul.f32.gmra.mxu0 %v204_v22  ;;  %308 = vmatmul.f32.gmra.mxu2 %v217_v23 }
  0x4b   : > { %272 = vmatmul.f32.gmra.mxu0 %v205_v24  ;;  %311 = vmatmul.f32.gmra.mxu2 %v218_v25 }
  0x53   : > { %275 = vmatmul.f32.gmra.mxu0 %v206_v26  ;;  %314 = vmatmul.f32.gmra.mxu2 %v219_v28 }
  0x5b   : > { %278 = vmatmul.f32.gmra.mxu0 %v207_v27  ;;  %317 = vmatmul.f32.gmra.mxu2 %v220_v30 }
  0x63   : > { %281 = vmatmul.f32.gmra.mxu0 %v208_v29  ;;  %320 = vmatmul.f32.gmra.mxu2 %v221_v32 }
  0x6b   : > { %284 = vmatmul.f32.gmra.mxu0 %v209_v31  ;;  %323 = vmatmul.f32.gmra.mxu2 %v222_v38 }
  0x73   : > { %287 = vmatmul.f32.gmra.mxu0 %v210_v33  ;;  %326 = vmatmul.f32.gmra.mxu2 %v223_v39 }
  0x7b   : > { %290 = vmatmul.f32.gmra.mxu0 %v211_v34  ;;  %329 = vmatmul.f32.gmra.mxu2 %v224_v40 }
  0x83   : > { %293 = vmatmul.f32.gmra.mxu0 %v212_v35  ;;  %332 = vmatmul.f32.gmra.mxu2 %v225_v57 }
  0x8b   : > { %296 = vmatmul.f32.gmra.mxu0 %v213_v36  ;;  %335 = vmatmul.f32.gmra.mxu2 %v226_v63 }
  0x93   : > { %338 = vmatmul.f32.gmra.mxu2 %v227_v20 }
  0xa8   : > { %v261_v41 = vpop.f32.mrf.mxu0 }
  0xa9   : > { %343 = vst [vmem:[#allocation2 + $0x8] sm:$0xff] %v261_v41 }
  0xae   : > { %v300_v42 = vpop.f32.mrf.mxu2 }
  0xaf   : > { %356 = vst [vmem:[#allocation2 + $0x70] sm:$0xff] %v300_v42  ;;  %775 = vrot.lane.b32.xlu1 %v300_v42, %s1508_s29 }
  0xb0   : > { %v264_v43 = vpop.f32.mrf.mxu0  ;;  %v398_v44 = vld [vmem:[#allocation2 + $0x2] sm:$0xff] }
  0xb1   : > { %344 = vst [vmem:[#allocation2 + $0x10] sm:$0xff] %v264_v43  ;;  %425 = vrot.lane.b32.xlu0 %v398_v44, %s1509_s30  ;;  %v506_v47 = vld [vmem:[#allocation2 + $0x3] sm:$0xff] }
  0xb2   : > { %v614_v52 = vld [vmem:[#allocation2 + $0x7] sm:$0xff] }
  0xb6   : > { %v303_v45 = vpop.f32.mrf.mxu2 }
  0xb7   : > { %357 = vst [vmem:[#allocation2 + $0x78] sm:$0xff] %v303_v45 }
  0xb8   : > { %v1633_v46 = vpop.f32.mrf.mxu0  ;;  %v507_v48 = vld [vmem:[#allocation2 + $0xb] sm:$0xff] }
  0xb9   : > { %345 = vst [vmem:[#allocation2 + $0x18] sm:$0xff] %v1633_v46  ;;  %533 = vrot.lane.b32.xlu0 %v506_v47, %s1510_s6  ;;  %535 = vrot.lane.b32.xlu1 %v507_v48, %s1510_s6  ;;  %v1641_v53 = vld [vmem:[#allocation2 + $0xf] sm:$0xff] }
  0xba   : > { %v399_v61 = vld [vmem:[#allocation2 + $0xa] sm:$0xff] }
  0xbe   : > { %v412_v49 = vld [vmem:[#allocation2 + $0x72] sm:$0xff]  ;;  %v306_v50 = vpop.f32.mrf.mxu2 }
  0xbf   : > { %453 = vrot.lane.b32.xlu2 %v412_v49, %s1509_s30  ;;  %358 = vst [vmem:[#allocation2 + $0x80] sm:$0xff] %v306_v50  ;;  %v520_v54 = vld [vmem:[#allocation2 + $0x73] sm:$0xff] }
  0xc0   : > { %v1639_v51 = vpop.f32.mrf.mxu0  ;;  %v628_v58 = vld [vmem:[#allocation2 + $0x77] sm:$0xff] }
  0xc1   : > { %346 = vst [vmem:[#allocation2 + $0x20] sm:$0xff] %v1639_v51  ;;  %641 = vrot.lane.b32.xlu0 %v614_v52, %s1511_s7  ;;  %643 = vrot.lane.b32.xlu1 %v1641_v53, %s1511_s7  ;;  %v400_v62 = vld [vmem:[#allocation2 + $0x12] sm:$0xff] }
  0xc2   : > { %v508_v3 = vld [vmem:[#allocation2 + $0x13] sm:$0xff] }
  0xc3   : > { %v1679_v8 = vld [vmem:[#allocation2 + $0x17] sm:$0xff] }
  0xc6   : > { %v309_v55 = vpop.f32.mrf.mxu2  ;;  %v413_v1 = vld [vmem:[#allocation2 + $0x7a] sm:$0xff] }
  0xc7   : > { %561 = vrot.lane.b32.xlu2 %v520_v54, %s1510_s6  ;;  %359 = vst [vmem:[#allocation2 + $0x88] sm:$0xff] %v309_v55  ;;  %v521_v5 = vld [vmem:[#allocation2 + $0x7b] sm:$0xff] }
  0xc8   : > { %v1648_v56 = vpop.f32.mrf.mxu0  ;;  %v401_v2 = vld [vmem:[#allocation2 + $0x1a] sm:$0xff] }
  0xc9   : > { %347 = vst [vmem:[#allocation2 + $0x28] sm:$0xff] %v1648_v56  ;;  %749 = vrot.lane.b32.xlu0 %v261_v41, %s1508_s29  ;;  %751 = vrot.lane.b32.xlu1 %v264_v43, %s1508_s29  ;;  %v1685_v10 = vld [vmem:[#allocation2 + $0x7f] sm:$0xff] }
  0xca   : > { %v509_v18 = vld [vmem:[#allocation2 + $0x1b] sm:$0xff] }
  0xcb   : > { %v1717_v22 = vld [vmem:[#allocation2 + $0x1f] sm:$0xff] }
  0xce   : > { %v1654_v59 = vpop.f32.mrf.mxu2  ;;  %v414_v6 = vld [vmem:[#allocation2 + $0x82] sm:$0xff] }
  0xcf   : > { %669 = vrot.lane.b32.xlu2 %v628_v58, %s1511_s7  ;;  %360 = vst [vmem:[#allocation2 + $0x90] sm:$0xff] %v1654_v59  ;;  %v522_v11 = vld [vmem:[#allocation2 + $0x83] sm:$0xff] }
  0xd0   : > { %v1658_v60 = vpop.f32.mrf.mxu0  ;;  %v1698_v14 = vld [vmem:[#allocation2 + $0x87] sm:$0xff] }
  0xd1   : > { %348 = vst [vmem:[#allocation2 + $0x30] sm:$0xff] %v1658_v60  ;;  %427 = vrot.lane.b32.xlu0 %v399_v61, %s1509_s30  ;;  %429 = vrot.lane.b32.xlu1 %v400_v62, %s1509_s30  ;;  %v402_v16 = vld [vmem:[#allocation2 + $0x22] sm:$0xff] }
  0xd2   : > { %v510_v23 = vld [vmem:[#allocation2 + $0x23] sm:$0xff] }
  0xd3   : > { %v1726_v26 = vld [vmem:[#allocation2 + $0x27] sm:$0xff] }
  0xd6   : > { %v1673_v7 = vpop.f32.mrf.mxu2  ;;  %v415_v19 = vld [vmem:[#allocation2 + $0x8a] sm:$0xff] }
  0xd7   : > { %777 = vrot.lane.b32.xlu2 %v303_v45, %s1508_s29  ;;  %361 = vst [vmem:[#allocation2 + $0x98] sm:$0xff] %v1673_v7  ;;  %v523_v24 = vld [vmem:[#allocation2 + $0x8b] sm:$0xff] }
  0xd8   : > { %v1665_v0 = vpop.f32.mrf.mxu0  ;;  %v1733_v27 = vld [vmem:[#allocation2 + $0x8f] sm:$0xff] }
  0xd9   : > { %349 = vst [vmem:[#allocation2 + $0x38] sm:$0xff] %v1665_v0  ;;  %455 = vrot.lane.b32.xlu0 %v413_v1, %s1509_s30  ;;  %431 = vrot.lane.b32.xlu1 %v401_v2, %s1509_s30  ;;  %v403_v33 = vld [vmem:[#allocation2 + $0x2a] sm:$0xff] }
  0xda   : > { %v511_v40 = vld [vmem:[#allocation2 + $0x2b] sm:$0xff] }
  0xdb   : > { %v1779_v47 = vld [vmem:[#allocation2 + $0x2f] sm:$0xff] }
  0xde   : > { %v1687_v12 = vpop.f32.mrf.mxu2  ;;  %v416_v28 = vld [vmem:[#allocation2 + $0x92] sm:$0xff] }
  0xdf   : > { %537 = vrot.lane.b32.xlu2 %v508_v3, %s1510_s6  ;;  %362 = vst [vmem:[#allocation2 + $0xa0] sm:$0xff] %v1687_v12  ;;  %v524_v29 = vld [vmem:[#allocation2 + $0x93] sm:$0xff] }
  0xe0   : > { %v1671_v4 = vpop.f32.mrf.mxu0  ;;  %v1750_v34 = vld [vmem:[#allocation2 + $0x97] sm:$0xff] }
  0xe1   : > { %350 = vst [vmem:[#allocation2 + $0x40] sm:$0xff] %v1671_v4  ;;  %563 = vrot.lane.b32.xlu0 %v521_v5, %s1510_s6  ;;  %457 = vrot.lane.b32.xlu1 %v414_v6, %s1509_s30  ;;  %v404_v41 = vld [vmem:[#allocation2 + $0x32] sm:$0xff] }
  0xe2   : > { %v512_v48 = vld [vmem:[#allocation2 + $0x33] sm:$0xff] }
  0xe3   : > { %v1793_v54 = vld [vmem:[#allocation2 + $0x37] sm:$0xff] }
  0xe6   : > { %v1704_v15 = vpop.f32.mrf.mxu2  ;;  %v417_v30 = vld [vmem:[#allocation2 + $0x9a] sm:$0xff] }
  0xe7   : > { %645 = vrot.lane.b32.xlu2 %v1679_v8, %s1511_s7  ;;  %363 = vst [vmem:[#allocation2 + $0xa8] sm:$0xff] %v1704_v15  ;;  %v525_v35 = vld [vmem:[#allocation2 + $0x9b] sm:$0xff] }
  0xe8   : > { %v1683_v9 = vpop.f32.mrf.mxu0  ;;  %v1765_v42 = vld [vmem:[#allocation2 + $0x9f] sm:$0xff] }
  0xe9   : > { %351 = vst [vmem:[#allocation2 + $0x48] sm:$0xff] %v1683_v9  ;;  %671 = vrot.lane.b32.xlu0 %v1685_v10, %s1511_s7  ;;  %565 = vrot.lane.b32.xlu1 %v522_v11, %s1510_s6  ;;  %v405_v49 = vld [vmem:[#allocation2 + $0x3a] sm:$0xff] }
  0xea   : > { %v1805_v61 = vld [vmem:[#allocation2 + $0x3f] sm:$0xff] }
  0xee   : > { %v1746_v32 = vpop.f32.mrf.mxu2  ;;  %v526_v1 = vld [vmem:[#allocation2 + $0xa3] sm:$0xff] }
  0xef   : > { %753 = vrot.lane.b32.xlu2 %v1633_v46, %s1508_s29  ;;  %364 = vst [vmem:[#allocation2 + $0xb0] sm:$0xff] %v1746_v32  ;;  %v1827_v6 = vld [vmem:[#allocation2 + $0xa7] sm:$0xff] }
  0xf0   : > { %v1696_v13 = vpop.f32.mrf.mxu0 }
  0xf1   : > { %352 = vst [vmem:[#allocation2 + $0x50] sm:$0xff] %v1696_v13  ;;  %779 = vrot.lane.b32.xlu0 %v306_v50, %s1508_s29  ;;  %673 = vrot.lane.b32.xlu1 %v1698_v14, %s1511_s7 }
  0xf6   : > { %v1759_v38 = vpop.f32.mrf.mxu2  ;;  %v419_v2 = vld [vmem:[#allocation2 + $0xaa] sm:$0xff] }
  0xf7   : > { %433 = vrot.lane.b32.xlu2 %v402_v16, %s1509_s30  ;;  %365 = vst [vmem:[#allocation2 + $0xb8] sm:$0xff] %v1759_v38  ;;  %v527_v11 = vld [vmem:[#allocation2 + $0xab] sm:$0xff] }
  0xf8   : > { %v1708_v17 = vpop.f32.mrf.mxu0 }
  0xf9   : > { %353 = vst [vmem:[#allocation2 + $0x58] sm:$0xff] %v1708_v17  ;;  %539 = vrot.lane.b32.xlu0 %v509_v18, %s1510_s6  ;;  %781 = vrot.lane.b32.xlu1 %v309_v55, %s1508_s29  ;;  %v513_v55 = vld [vmem:[#allocation2 + $0x3b] sm:$0xff] }
  0xfe   : > { %v1776_v46 = vpop.f32.mrf.mxu2  ;;  %v420_v16 = vld [vmem:[#allocation2 + $0xb2] sm:$0xff] }
  0xff   : > { %459 = vrot.lane.b32.xlu2 %v415_v19, %s1509_s30  ;;  %366 = vst [vmem:[#allocation2 + $0xc0] sm:$0xff] %v1776_v46 }
 0x100   : > { %v1715_v21 = vpop.f32.mrf.mxu0 }
 0x101   : > { %354 = vst [vmem:[#allocation2 + $0x60] sm:$0xff] %v1715_v21  ;;  %647 = vrot.lane.b32.xlu0 %v1717_v22, %s1511_s7  ;;  %541 = vrot.lane.b32.xlu1 %v510_v23, %s1510_s6  ;;  %v406_v23 = vld [vmem:[#allocation2 + $0x42] sm:$0xff] }
 0x106   : > { %v1835_v19 = vpop.f32.mrf.mxu2 }
 0x107   : > { %567 = vrot.lane.b32.xlu2 %v523_v24, %s1510_s6  ;;  %367 = vst [vmem:[#allocation2 + $0xc8] sm:$0xff] %v1835_v19  ;;  %v1843_v24 = vld [vmem:[#allocation2 + $0xaf] sm:$0xff] }
 0x108   : > { %v1724_v25 = vpop.f32.mrf.mxu0 }
 0x109   : > { %355 = vst [vmem:[#allocation2 + $0x68] sm:$0xff] %v1724_v25  ;;  %755 = vrot.lane.b32.xlu0 %v1639_v51, %s1508_s29  ;;  %649 = vrot.lane.b32.xlu1 %v1726_v26, %s1511_s7 }
 0x10f   : > { %675 = vrot.lane.b32.xlu2 %v1733_v27, %s1511_s7 }
 0x111   : > { %461 = vrot.lane.b32.xlu0 %v416_v28, %s1509_s30  ;;  %757 = vrot.lane.b32.xlu1 %v1648_v56, %s1508_s29  ;;  %v528_v28 = vld [vmem:[#allocation2 + $0xb3] sm:$0xff] }
 0x117   : > { %783 = vrot.lane.b32.xlu2 %v1654_v59, %s1508_s29  ;;  %v418_v59 = vld [vmem:[#allocation2 + $0xa2] sm:$0xff] }
 0x119   : > { %v1742_v31 = vpop.permute.xlu2 %453  ;;  %569 = vrot.lane.b32.xlu0 %v524_v29, %s1510_s6  ;;  %463 = vrot.lane.b32.xlu1 %v417_v30, %s1509_s30  ;;  %v1850_v30 = vpop.f32.mrf.mxu2 }
 0x11a   : > { %368 = vst [vmem:[#allocation2 + $0xd0] sm:$0xff] %v1850_v30 }
 0x11f   : > { %435 = vrot.lane.b32.xlu2 %v403_v33, %s1509_s30 }
 0x121   : > { %v1752_v36 = vpop.permute.xlu2 %561  ;;  %677 = vrot.lane.b32.xlu0 %v1750_v34, %s1511_s7  ;;  %571 = vrot.lane.b32.xlu1 %v525_v35, %s1510_s6  ;;  %v1757_v37 = vpop.permute.xlu1 %775 }
 0x123   : > { %v1761_v39 = vpop.permute.xlu0 %425 }
 0x127   : > { %543 = vrot.lane.b32.xlu2 %v511_v40, %s1510_s6  ;;  %v514_v40 = vld [vmem:[#allocation2 + $0x43] sm:$0xff] }
 0x129   : > { %v1767_v43 = vpop.permute.xlu2 %669  ;;  %437 = vrot.lane.b32.xlu0 %v404_v41, %s1509_s30  ;;  %679 = vrot.lane.b32.xlu1 %v1765_v42, %s1511_s7  ;;  %v407_v41 = vld [vmem:[#allocation2 + $0x4a] sm:$0xff] }
 0x12b   : > { %v1772_v44 = vpop.permute.xlu0 %533  ;;  %v1774_v45 = vpop.permute.xlu1 %535 }
 0x12f   : > { %651 = vrot.lane.b32.xlu2 %v1779_v47, %s1511_s7 }
 0x131   : > { %v1783_v50 = vpop.permute.xlu2 %777  ;;  %545 = vrot.lane.b32.xlu0 %v512_v48, %s1510_s6  ;;  %439 = vrot.lane.b32.xlu1 %v405_v49, %s1509_s30  ;;  %v1858_v48 = vld [vmem:[#allocation2 + $0xb7] sm:$0xff] }
 0x132   : > { %2555 = vst [vmem:[#allocation12_spill] sm:$0xff] %v1858_v48 }
 0x133   : > { %v1787_v51 = vpop.permute.xlu0 %641  ;;  %v1789_v52 = vpop.permute.xlu1 %643 }
 0x137   : > { %759 = vrot.lane.b32.xlu2 %v1658_v60, %s1508_s29 }
 0x139   : > { %v1795_v56 = vpop.permute.xlu2 %537  ;;  %653 = vrot.lane.b32.xlu0 %v1793_v54, %s1511_s7  ;;  %547 = vrot.lane.b32.xlu1 %v513_v55, %s1510_s6 }
 0x13a   : > { %2546 = vst [vmem:[#allocation3_spill] sm:$0xff] %v1795_v56 }
 0x13b   : > { %v1800_v57 = vpop.permute.xlu0 %749  ;;  %v1802_v58 = vpop.permute.xlu1 %751 }
 0x13f   : > { %465 = vrot.lane.b32.xlu2 %v418_v59, %s1509_s30 }
 0x141   : > { %v1807_v60 = vpop.permute.xlu2 %645  ;;  %761 = vrot.lane.b32.xlu0 %v1665_v0, %s1508_s29  ;;  %655 = vrot.lane.b32.xlu1 %v1805_v61, %s1511_s7 }
 0x142   : > { %2547 = vst [vmem:[#allocation4_spill] sm:$0xff] %v1807_v60  ;;  %v2053_v60 = vld [vmem:[#allocation2 + $0x19] sm:$0xff] }
 0x143   : > { %v1813_v62 = vpop.permute.xlu0 %427  ;;  %v1815_v63 = vpop.permute.xlu1 %429  ;;  %2602 = vst [vmem:[#allocation59_spill] sm:$0xff] %v2053_v60 }
 0x144   : > { %2548 = vst [vmem:[#allocation5_spill] sm:$0xff] %v1815_v63 }
 0x147   : > { %573 = vrot.lane.b32.xlu2 %v526_v1, %s1510_s6  ;;  %v1869_v1 = vld [vmem:[#allocation2 + $0x47] sm:$0xff] }
 0x148   : > { %2558 = vst [vmem:[#allocation15_spill] sm:$0xff] %v1869_v1 }
 0x149   : > { %v1818_v3 = vpop.permute.xlu2 %753  ;;  %467 = vrot.lane.b32.xlu0 %v419_v2, %s1509_s30  ;;  %763 = vrot.lane.b32.xlu1 %v1671_v4, %s1508_s29  ;;  %v515_v2 = vld [vmem:[#allocation2 + $0x4b] sm:$0xff] }
 0x14a   : > { %2549 = vst [vmem:[#allocation6_spill] sm:$0xff] %v1818_v3  ;;  %v381_v3 = vld [vmem:[#allocation2 + $0x51] sm:$0xff] }
 0x14b   : > { %v1823_v5 = vpop.permute.xlu0 %455  ;;  %v1825_v0 = vpop.permute.xlu1 %431 }
 0x14c   : > { %2550 = vst [vmem:[#allocation7_spill] sm:$0xff] %v1825_v0 }
 0x14f   : > { %681 = vrot.lane.b32.xlu2 %v1827_v6, %s1511_s7 }
 0x151   : > { %v1831_v18 = vpop.permute.xlu2 %433  ;;  %575 = vrot.lane.b32.xlu0 %v527_v11, %s1510_s6  ;;  %469 = vrot.lane.b32.xlu1 %v420_v16, %s1509_s30  ;;  %v408_v11 = vld [vmem:[#allocation2 + $0x52] sm:$0xff] }
 0x152   : > { %2551 = vst [vmem:[#allocation8_spill] sm:$0xff] %v1831_v18 }
 0x153   : > { %v1838_v4 = vpop.permute.xlu0 %563  ;;  %v1840_v20 = vpop.permute.xlu1 %457 }
 0x154   : > { %2552 = vst [vmem:[#allocation9_spill] sm:$0xff] %v1840_v20 }
 0x157   : > { %441 = vrot.lane.b32.xlu2 %v406_v23, %s1509_s30 }
 0x159   : > { %v1845_v29 = vpop.permute.xlu2 %459  ;;  %683 = vrot.lane.b32.xlu0 %v1843_v24, %s1511_s7  ;;  %577 = vrot.lane.b32.xlu1 %v528_v28, %s1510_s6 }
 0x15a   : > { %2553 = vst [vmem:[#allocation10_spill] sm:$0xff] %v1845_v29 }
 0x15b   : > { %v1853_v33 = vpop.permute.xlu0 %671  ;;  %v1855_v35 = vpop.permute.xlu1 %565 }
 0x15c   : > { %2554 = vst [vmem:[#allocation11_spill] sm:$0xff] %v1855_v35 }
 0x15f   : > { %549 = vrot.lane.b32.xlu2 %v514_v40, %s1510_s6  ;;  %v1883_v40 = vld [vmem:[#allocation2 + $0x4f] sm:$0xff] }
 0x160   : > { %2562 = vst [vmem:[#allocation19_spill] sm:$0xff] %v1883_v40 }
 0x161   : > { %v1860_v49 = vpop.permute.xlu2 %567  ;;  %443 = vrot.lane.b32.xlu0 %v407_v41, %s1509_s30  ;;  %685 = vrot.lane.b32.xlu1 %v1858_v48, %s1511_s7  ;;  %v516_v41 = vld [vmem:[#allocation2 + $0x53] sm:$0xff]  ;;  %v1034_v48 = vld [vmem:[#allocation2 + $0x7e] sm:$0xff] }
 0x162   : > { %2556 = vst [vmem:[#allocation13_spill] sm:$0xff] %v1860_v49  ;;  %v1895_v49 = vld [vmem:[#allocation2 + $0x57] sm:$0xff] }
 0x163   : > { %v1865_v55 = vpop.permute.xlu0 %779  ;;  %v1867_v59 = vpop.permute.xlu1 %673  ;;  %2566 = vst [vmem:[#allocation23_spill] sm:$0xff] %v1895_v49 }
 0x164   : > { %2557 = vst [vmem:[#allocation14_spill] sm:$0xff] %v1867_v59  ;;  %v2059_v59 = vld [vmem:[#allocation2 + $0x41] sm:$0xff] }
 0x167   : > { %657 = vrot.lane.b32.xlu2 %v1869_v1, %s1511_s7 }
 0x169   : > { %v1873_v16 = vpop.permute.xlu2 %675  ;;  %551 = vrot.lane.b32.xlu0 %v515_v2, %s1510_s6  ;;  %445 = vrot.lane.b32.xlu1 %v408_v11, %s1509_s30 }
 0x16a   : > { %2559 = vst [vmem:[#allocation16_spill] sm:$0xff] %v1873_v16  ;;  %v421_v16 = vld [vmem:[#allocation2 + $0xba] sm:$0xff] }
 0x16b   : > { %v1877_v23 = vpop.permute.xlu0 %539  ;;  %v1879_v28 = vpop.permute.xlu1 %781 }
 0x16c   : > { %2560 = vst [vmem:[#allocation17_spill] sm:$0xff] %v1877_v23 }
 0x16d   : > { %2561 = vst [vmem:[#allocation18_spill] sm:$0xff] %v1879_v28 }
 0x16f   : > { %765 = vrot.lane.b32.xlu2 %v1683_v9, %s1508_s29 }
 0x171   : > { %v1885_v18 = vpop.permute.xlu2 %783  ;;  %659 = vrot.lane.b32.xlu0 %v1883_v40, %s1511_s7  ;;  %553 = vrot.lane.b32.xlu1 %v516_v41, %s1510_s6 }
 0x172   : > { %2563 = vst [vmem:[#allocation20_spill] sm:$0xff] %v1885_v18 }
 0x173   : > { %v1890_v2 = vpop.permute.xlu0 %647  ;;  %v1892_v11 = vpop.permute.xlu1 %541 }
 0x174   : > { %2564 = vst [vmem:[#allocation21_spill] sm:$0xff] %v1890_v2  ;;  %v529_v2 = vld [vmem:[#allocation2 + $0xbb] sm:$0xff] }
 0x175   : > { %2565 = vst [vmem:[#allocation22_spill] sm:$0xff] %v1892_v11  ;;  %v422_v11 = vld [vmem:[#allocation2 + $0xc2] sm:$0xff] }
 0x177   : > { %471 = vrot.lane.b32.xlu2 %v421_v16, %s1509_s30 }
 0x179   : > { %v1897_v9 = vpop.permute.xlu2 %435  ;;  %767 = vrot.lane.b32.xlu0 %v1696_v13, %s1508_s29  ;;  %661 = vrot.lane.b32.xlu1 %v1895_v49, %s1511_s7 }
 0x17a   : > { %2567 = vst [vmem:[#allocation24_spill] sm:$0xff] %v1897_v9  ;;  %v1917_v9 = vpop.f32.mrf.mxu2 }
 0x17b   : > { %v1903_v18 = vpop.permute.xlu0 %755  ;;  %v1905_v41 = vpop.permute.xlu1 %649  ;;  %369 = vst [vmem:[#allocation2 + $0xd8] sm:$0xff] %v1917_v9 }
 0x17c   : > { %2568 = vst [vmem:[#allocation25_spill] sm:$0xff] %v1903_v18  ;;  %v519_v18 = vld [vmem:[#allocation2 + $0x6b] sm:$0xff] }
 0x17d   : > { %2569 = vst [vmem:[#allocation26_spill] sm:$0xff] %v1905_v41  ;;  %v1920_v41 = vld [vmem:[#allocation2 + $0xbf] sm:$0xff] }
 0x17e   : > { %2573 = vst [vmem:[#allocation30_spill] sm:$0xff] %v1920_v41 }
 0x17f   : > { %579 = vrot.lane.b32.xlu2 %v529_v2, %s1510_s6  ;;  %v530_v2 = vld [vmem:[#allocation2 + $0xc3] sm:$0xff] }
 0x181   : > { %v1908_v29 = vpop.permute.xlu2 %543  ;;  %473 = vrot.lane.b32.xlu0 %v422_v11, %s1509_s30  ;;  %769 = vrot.lane.b32.xlu1 %v1708_v17, %s1508_s29 }
 0x182   : > { %2570 = vst [vmem:[#allocation27_spill] sm:$0xff] %v1908_v29  ;;  %v411_v29 = vld [vmem:[#allocation2 + $0x6a] sm:$0xff] }
 0x183   : > { %v1913_v16 = vpop.permute.xlu0 %461  ;;  %v1915_v13 = vpop.permute.xlu1 %757 }
 0x184   : > { %2571 = vst [vmem:[#allocation28_spill] sm:$0xff] %v1913_v16  ;;  %v1933_v16 = vld [vmem:[#allocation2 + $0xc7] sm:$0xff] }
 0x185   : > { %2572 = vst [vmem:[#allocation29_spill] sm:$0xff] %v1915_v13  ;;  %v409_v13 = vld [vmem:[#allocation2 + $0x5a] sm:$0xff] }
 0x186   : > { %2577 = vst [vmem:[#allocation34_spill] sm:$0xff] %v1933_v16 }
 0x187   : > { %687 = vrot.lane.b32.xlu2 %v1920_v41, %s1511_s7 }
 0x189   : > { %v1924_v49 = vpop.permute.xlu2 %651  ;;  %581 = vrot.lane.b32.xlu0 %v530_v2, %s1510_s6  ;;  %451 = vrot.lane.b32.xlu1 %v411_v29, %s1509_s30 }
 0x18a   : > { %2574 = vst [vmem:[#allocation31_spill] sm:$0xff] %v1924_v49  ;;  %v517_v49 = vld [vmem:[#allocation2 + $0x5b] sm:$0xff] }
 0x18b   : > { %v1928_v17 = vpop.permute.xlu0 %569  ;;  %v1930_v11 = vpop.permute.xlu1 %463 }
 0x18c   : > { %2575 = vst [vmem:[#allocation32_spill] sm:$0xff] %v1928_v17  ;;  %v627_v17 = vld [vmem:[#allocation2 + $0x6f] sm:$0xff] }
 0x18d   : > { %2576 = vst [vmem:[#allocation33_spill] sm:$0xff] %v1930_v11  ;;  %v410_v11 = vld [vmem:[#allocation2 + $0x62] sm:$0xff] }
 0x18f   : > { %447 = vrot.lane.b32.xlu2 %v409_v13, %s1509_s30 }
 0x191   : > { %v1935_v23 = vpop.permute.xlu2 %759  ;;  %689 = vrot.lane.b32.xlu0 %v1933_v16, %s1511_s7  ;;  %559 = vrot.lane.b32.xlu1 %v519_v18, %s1510_s6  ;;  %v1953_v18 = vld [vmem:[#allocation2 + $0x5f] sm:$0xff] }
 0x192   : > { %2578 = vst [vmem:[#allocation35_spill] sm:$0xff] %v1935_v23 }
 0x193   : > { %v1940_v2 = vpop.permute.xlu0 %677  ;;  %v1942_v29 = vpop.permute.xlu1 %571  ;;  %2584 = vst [vmem:[#allocation41_spill] sm:$0xff] %v1953_v18 }
 0x194   : > { %2579 = vst [vmem:[#allocation36_spill] sm:$0xff] %v1940_v2 }
 0x195   : > { %2580 = vst [vmem:[#allocation37_spill] sm:$0xff] %v1942_v29  ;;  %v518_v29 = vld [vmem:[#allocation2 + $0x63] sm:$0xff] }
 0x197   : > { %555 = vrot.lane.b32.xlu2 %v517_v49, %s1510_s6 }
 0x199   : > { %v1945_v13 = vpop.permute.xlu2 %465  ;;  %449 = vrot.lane.b32.xlu0 %v410_v11, %s1509_s30  ;;  %667 = vrot.lane.b32.xlu1 %v627_v17, %s1511_s7  ;;  %v1968_v11 = vld [vmem:[#allocation2 + $0x67] sm:$0xff] }
 0x19a   : > { %2581 = vst [vmem:[#allocation38_spill] sm:$0xff] %v1945_v13  ;;  %v423_v13 = vld [vmem:[#allocation2 + $0xca] sm:$0xff] }
 0x19b   : > { %v1949_v23 = vpop.permute.xlu0 %437  ;;  %v1951_v16 = vpop.permute.xlu1 %679  ;;  %2587 = vst [vmem:[#allocation44_spill] sm:$0xff] %v1968_v11 }
 0x19c   : > { %2582 = vst [vmem:[#allocation39_spill] sm:$0xff] %v1949_v23 }
 0x19d   : > { %2583 = vst [vmem:[#allocation40_spill] sm:$0xff] %v1951_v16 }
 0x19f   : > { %663 = vrot.lane.b32.xlu2 %v1953_v18, %s1511_s7  ;;  %v380_v18 = vld [vmem:[#allocation2 + $0x49] sm:$0xff] }
 0x1a1   : > { %v1957_v2 = vpop.permute.xlu2 %573  ;;  %557 = vrot.lane.b32.xlu0 %v518_v29, %s1510_s6  ;;  %787 = vrot.lane.b32.xlu1 %v1687_v12, %s1508_s29 }
 0x1a2   : > { %2585 = vst [vmem:[#allocation42_spill] sm:$0xff] %v1957_v2  ;;  %v531_v2 = vld [vmem:[#allocation2 + $0xcb] sm:$0xff] }
 0x1a3   : > { %v1962_v49 = vpop.permute.xlu0 %545  ;;  %v1964_v17 = vpop.permute.xlu1 %439 }
 0x1a4   : > { %2586 = vst [vmem:[#allocation43_spill] sm:$0xff] %v1962_v49 }
 0x1a7   : > { %771 = vrot.lane.b32.xlu2 %v1715_v21, %s1508_s29 }
 0x1a9   : > { %v1970_v23 = vpop.permute.xlu2 %681  ;;  %665 = vrot.lane.b32.xlu0 %v1968_v11, %s1511_s7  ;;  %475 = vrot.lane.b32.xlu1 %v423_v13, %s1509_s30  ;;  %v1992_v13 = vld [vmem:[#allocation2 + $0xcf] sm:$0xff] }
 0x1aa   : > { %2588 = vst [vmem:[#allocation45_spill] sm:$0xff] %v1970_v23  ;;  %v532_v11 = vld [vmem:[#allocation2 + $0xd3] sm:$0xff] }
 0x1ab   : > { %v1975_v29 = vpop.permute.xlu0 %653  ;;  %v1977_v12 = vpop.permute.xlu1 %547  ;;  %2591 = vst [vmem:[#allocation48_spill] sm:$0xff] %v1992_v13 }
 0x1ac   : > { %2589 = vst [vmem:[#allocation46_spill] sm:$0xff] %v1975_v29 }
 0x1af   : > { %789 = vrot.lane.b32.xlu2 %v1704_v15, %s1508_s29 }
 0x1b1   : > { %v1981_v49 = vpop.permute.xlu2 %441  ;;  %773 = vrot.lane.b32.xlu0 %v1724_v25, %s1508_s29  ;;  %583 = vrot.lane.b32.xlu1 %v531_v2, %s1510_s6  ;;  %v424_v2 = vld [vmem:[#allocation2 + $0xd2] sm:$0xff] }
 0x1b3   : > { %v1986_v21 = vpop.permute.xlu0 %761  ;;  %v1988_v23 = vpop.permute.xlu1 %655 }
 0x1b4   : > { %2590 = vst [vmem:[#allocation47_spill] sm:$0xff] %v1986_v21 }
 0x1b7   : > { %795 = vrot.lane.b32.xlu2 %v1776_v46, %s1508_s29 }
 0x1b9   : > { %v1994_v29 = vpop.permute.xlu2 %549  ;;  %785 = vrot.lane.b32.xlu0 %v1673_v7, %s1508_s29  ;;  %691 = vrot.lane.b32.xlu1 %v1992_v13, %s1511_s7 }
 0x1bb   : > { %v2000_v15 = vpop.permute.xlu0 %467  ;;  %v2002_v25 = vpop.permute.xlu1 %763 }
 0x1bc   : > { %2592 = vst [vmem:[#allocation49_spill] sm:$0xff] %v2000_v15 }
 0x1bf   : > { %477 = vrot.lane.b32.xlu2 %v424_v2, %s1509_s30 }
 0x1c1   : > { %v2005_v21 = vpop.permute.xlu2 %657  ;;  %791 = vrot.lane.b32.xlu0 %v1746_v32, %s1508_s29  ;;  %793 = vrot.lane.b32.xlu1 %v1759_v38, %s1508_s29  ;;  %v2026_v38 = vld [vmem:[#allocation2 + $0xd7] sm:$0xff] }
 0x1c2   : > { %2597 = vst [vmem:[#allocation54_spill] sm:$0xff] %v2026_v38 }
 0x1c3   : > { %v2011_v46 = vpop.permute.xlu0 %575  ;;  %v2013_v7 = vpop.permute.xlu1 %469 }
 0x1c4   : > { %2593 = vst [vmem:[#allocation50_spill] sm:$0xff] %v2011_v46 }
 0x1c5   : > { %2594 = vst [vmem:[#allocation51_spill] sm:$0xff] %v2013_v7  ;;  %v2030_v7 = vld [vmem:[#allocation2 + $0x9] sm:$0xff] }
 0x1c7   : > { %585 = vrot.lane.b32.xlu2 %v532_v11, %s1510_s6  ;;  %v2032_v11 = vld [vmem:[#allocation2 + $0x11] sm:$0xff] }
 0x1c9   : > { %v2016_v15 = vpop.permute.xlu2 %765  ;;  %797 = vrot.lane.b32.xlu0 %v1835_v19, %s1508_s29  ;;  %799 = vrot.lane.b32.xlu1 %v1850_v30, %s1508_s29 }
 0x1cb   : > { %v2022_v2 = vpop.permute.xlu0 %683  ;;  %v2024_v32 = vpop.permute.xlu1 %577 }
 0x1cc   : > { %2595 = vst [vmem:[#allocation52_spill] sm:$0xff] %v2022_v2  ;;  %v2044_v2 = vld [vmem:[#allocation2 + $0x21] sm:$0xff] }
 0x1cd   : > { %2596 = vst [vmem:[#allocation53_spill] sm:$0xff] %v2024_v32  ;;  %v2040_v32 = vld [vmem:[#allocation2 + $0xb9] sm:$0xff] }
 0x1ce   : > { %2599 = vst [vmem:[#allocation56_spill] sm:$0xff] %v2040_v32 }
 0x1cf   : > { %693 = vrot.lane.b32.xlu2 %v2026_v38, %s1511_s7  ;;  %2600 = vst [vmem:[#allocation57_spill] sm:$0xff] %v2044_v2  ;;  %v2046_v38 = vld [vmem:[#allocation2 + $0x29] sm:$0xff] }
 0x1d0   : > { %2601 = vst [vmem:[#allocation58_spill] sm:$0xff] %v2046_v38 }
 0x1d1   : > { %v472_v46 = vpop.permute.xlu2 %471  ;;  %831 = vrot.lane.b32.xlu0 %v2030_v7, %s1512_s8  ;;  %833 = vrot.lane.b32.xlu1 %v2032_v11, %s1512_s8 }
 0x1d2   : > { %v502_v16 = vadd.f32 %v472_v46, %v2040_v32  ;;  %v2057_v46 = vld [vmem:[#allocation2 + $0x39] sm:$0xff] }
 0x1d3   : > { %v444_v19 = vpop.permute.xlu0 %443  ;;  %v2038_v30 = vpop.permute.xlu1 %685  ;;  %v2089_v32 = vld [vmem:[#allocation2 + $0x79] sm:$0xff] }
 0x1d4   : > { %2598 = vst [vmem:[#allocation55_spill] sm:$0xff] %v2038_v30  ;;  %v488_v30 = vadd.f32 %v444_v19, %v380_v18 }
 0x1d7   : > { %801 = vrot.lane.b32.xlu2 %v1917_v9, %s1508_s29 }
 0x1d9   : > { %v580_v13 = vpop.permute.xlu2 %579  ;;  %837 = vrot.lane.b32.xlu0 %v2044_v2, %s1512_s8  ;;  %839 = vrot.lane.b32.xlu1 %v2046_v38, %s1512_s8  ;;  %v382_v38 = vld [vmem:[#allocation2 + $0x59] sm:$0xff] }
 0x1da   : > { %v610_v0 = vadd.f32 %v580_v13, %v502_v16 }
 0x1db   : > { %v552_v41 = vpop.permute.xlu0 %551  ;;  %v446_v40 = vpop.permute.xlu1 %445 }
 0x1dc   : > { %v596_v9 = vadd.f32 %v552_v41, %v488_v30  ;;  %v489_v28 = vadd.f32 %v446_v40, %v381_v3  ;;  %v2067_v30 = vld [vmem:[#allocation2 + $0x31] sm:$0xff] }
 0x1dd   : > { %2603 = vst [vmem:[#allocation60_spill] sm:$0xff] %v2067_v30 }
 0x1df   : > { %835 = vrot.lane.b32.xlu2 %v2053_v60, %s1512_s8 }
 0x1e1   : > { %v688_v2 = vpop.permute.xlu2 %687  ;;  %843 = vrot.lane.b32.xlu0 %v2057_v46, %s1512_s8  ;;  %845 = vrot.lane.b32.xlu1 %v2059_v59, %s1512_s8 }
 0x1e2   : > { %v2065_v16 = vadd.f32 %v688_v2, %v610_v0 }
 0x1e3   : > { %v660_v41 = vpop.permute.xlu0 %659  ;;  %v554_v40 = vpop.permute.xlu1 %553 }
 0x1e4   : > { %v704_v13 = vadd.f32 %v660_v41, %v596_v9  ;;  %v597_v19 = vadd.f32 %v554_v40, %v489_v28  ;;  %v2076_v28 = vld [vmem:[#allocation2 + $0x71] sm:$0xff]  ;;  %v384_v9 = vld [vmem:[#allocation2 + $0x69] sm:$0xff] }
 0x1e7   : > { %841 = vrot.lane.b32.xlu2 %v2067_v30, %s1512_s8 }
 0x1e9   : > { %v448_v60 = vpop.permute.xlu2 %447  ;;  %849 = vrot.lane.b32.xlu0 %v381_v3, %s1512_s8  ;;  %851 = vrot.lane.b32.xlu1 %v382_v38, %s1512_s8 }
 0x1ea   : > { %v490_v1 = vadd.f32 %v448_v60, %v382_v38  ;;  %v383_v38 = vld [vmem:[#allocation2 + $0x61] sm:$0xff] }
 0x1eb   : > { %v768_v35 = vpop.permute.xlu0 %767  ;;  %v662_v20 = vpop.permute.xlu1 %661 }
 0x1ec   : > { %v2073_v0 = vadd.f32 %v768_v35, %v704_v13  ;;  %v705_v2 = vadd.f32 %v662_v20, %v597_v19  ;;  %v912_v20 = vld [vmem:[#allocation2 + $0xd] sm:$0xff]  ;;  %v926_v35 = vld [vmem:[#allocation2 + $0x7d] sm:$0xff] }
 0x1ef   : > { %847 = vrot.lane.b32.xlu2 %v380_v18, %s1512_s8  ;;  %v2084_v18 = vld [vmem:[#allocation2 + $0xc1] sm:$0xff] }
 0x1f0   : > { %2604 = vst [vmem:[#allocation61_spill] sm:$0xff] %v2084_v18 }
 0x1f1   : > { %v556_v41 = vpop.permute.xlu2 %555  ;;  %855 = vrot.lane.b32.xlu0 %v384_v9, %s1512_s8  ;;  %857 = vrot.lane.b32.xlu1 %v2076_v28, %s1512_s8 }
 0x1f2   : > { %v598_v3 = vadd.f32 %v556_v41, %v490_v1 }
 0x1f3   : > { %v474_v40 = vpop.permute.xlu0 %473  ;;  %v770_v30 = vpop.permute.xlu1 %769 }
 0x1f4   : > { %v2081_v60 = vadd.f32 %v770_v30, %v705_v2  ;;  %v503_v19 = vadd.f32 %v474_v40, %v2084_v18 }
 0x1f7   : > { %853 = vrot.lane.b32.xlu2 %v383_v38, %s1512_s8 }
 0x1f9   : > { %v664_v13 = vpop.permute.xlu2 %663  ;;  %939 = vrot.lane.b32.xlu0 %v912_v20, %s1513_s9  ;;  %967 = vrot.lane.b32.xlu1 %v926_v35, %s1513_s9 }
 0x1fa   : > { %v706_v1 = vadd.f32 %v664_v13, %v598_v3  ;;  %v2101_v13 = vld [vmem:[#allocation2 + $0x81] sm:$0xff] }
 0x1fb   : > { %v582_v41 = vpop.permute.xlu0 %581  ;;  %v452_v56 = vpop.permute.xlu1 %451 }
 0x1fc   : > { %v611_v30 = vadd.f32 %v582_v41, %v503_v19  ;;  %v492_v2 = vadd.f32 %v452_v56, %v384_v9  ;;  %v1020_v9 = vld [vmem:[#allocation2 + $0xe] sm:$0xff] }
 0x1fd   : > { %v913_v19 = vld [vmem:[#allocation2 + $0x15] sm:$0xff] }
 0x1ff   : > { %859 = vrot.lane.b32.xlu2 %v2089_v32, %s1512_s8 }
 0x201   : > { %v772_v63 = vpop.permute.xlu2 %771  ;;  %1075 = vrot.lane.b32.xlu0 %v1034_v48, %s1514_s10  ;;  %1129 = vrot.lane.b32.xlu1 %v1641_v53, %s1515_s11 }
 0x202   : > { %v2096_v40 = vadd.f32 %v772_v63, %v706_v1 }
 0x203   : > { %v690_v3 = vpop.permute.xlu0 %689  ;;  %v560_v20 = vpop.permute.xlu1 %559 }
 0x204   : > { %v2098_v35 = vadd.f32 %v690_v3, %v611_v30  ;;  %v600_v56 = vadd.f32 %v560_v20, %v492_v2  ;;  %v1021_v30 = vld [vmem:[#allocation2 + $0x16] sm:$0xff]  ;;  %v1035_v2 = vld [vmem:[#allocation2 + $0x86] sm:$0xff] }
 0x207   : > { %1047 = vrot.lane.b32.xlu2 %v1020_v9, %s1514_s10 }
 0x209   : > { %v2103_v41 = vpop.permute.xlu2 %789  ;;  %861 = vrot.lane.b32.xlu0 %v2101_v13, %s1512_s8  ;;  %941 = vrot.lane.b32.xlu1 %v913_v19, %s1513_s9 }
 0x20a   : > { %2605 = vst [vmem:[#allocation62_spill] sm:$0xff] %v2103_v41 }
 0x20b   : > { %v450_v53 = vpop.permute.xlu0 %449  ;;  %v668_v63 = vpop.permute.xlu1 %667 }
 0x20c   : > { %v491_v48 = vadd.f32 %v450_v53, %v383_v38  ;;  %v2108_v1 = vadd.f32 %v668_v63, %v600_v56  ;;  %v927_v38 = vld [vmem:[#allocation2 + $0x85] sm:$0xff] }
 0x20d   : > { %v2120_v56 = vld [vmem:[#allocation2 + $0x89] sm:$0xff] }
 0x20f   : > { %1157 = vrot.lane.b32.xlu2 %v1685_v10, %s1515_s11 }
 0x211   : > { %v796_v3 = vpop.permute.xlu2 %795  ;;  %1049 = vrot.lane.b32.xlu0 %v1021_v30, %s1514_s10  ;;  %1077 = vrot.lane.b32.xlu1 %v1035_v2, %s1514_s10  ;;  %v2126_v30 = vld [vmem:[#allocation2 + $0xd1] sm:$0xff] }
 0x212   : > { %v2115_v20 = vadd.f32 %v796_v3, %v2065_v16  ;;  %v928_v2 = vld [vmem:[#allocation2 + $0x8d] sm:$0xff]  ;;  %v1022_v3 = vld [vmem:[#allocation2 + $0x1e] sm:$0xff] }
 0x213   : > { %v558_v9 = vpop.permute.xlu0 %557  ;;  %v2117_v19 = vpop.permute.xlu1 %787 }
 0x214   : > { %2606 = vst [vmem:[#allocation63_spill] sm:$0xff] %v2115_v20  ;;  %v599_v41 = vadd.f32 %v558_v9, %v491_v48 }
 0x215   : > { %2607 = vst [vmem:[#allocation64_spill] sm:$0xff] %v2117_v19 }
 0x217   : > { %969 = vrot.lane.b32.xlu2 %v927_v38, %s1513_s9  ;;  %v2131_v38 = vld [vmem:[#allocation2 + $0xc9] sm:$0xff] }
 0x219   : > { %v478_v10 = vpop.permute.xlu2 %477  ;;  %1159 = vrot.lane.b32.xlu0 %v1698_v14, %s1515_s11  ;;  %863 = vrot.lane.b32.xlu1 %v2120_v56, %s1512_s8 }
 0x21a   : > { %v505_v48 = vadd.f32 %v478_v10, %v2126_v30 }
 0x21b   : > { %v666_v53 = vpop.permute.xlu0 %665  ;;  %v476_v63 = vpop.permute.xlu1 %475 }
 0x21c   : > { %v707_v16 = vadd.f32 %v666_v53, %v599_v41  ;;  %v504_v20 = vadd.f32 %v476_v63, %v2131_v38 }
 0x21f   : > { %1131 = vrot.lane.b32.xlu2 %v1679_v8, %s1515_s11  ;;  %v914_v8 = vld [vmem:[#allocation2 + $0x1d] sm:$0xff] }
 0x221   : > { %v586_v9 = vpop.permute.xlu2 %585  ;;  %971 = vrot.lane.b32.xlu0 %v928_v2, %s1513_s9  ;;  %1051 = vrot.lane.b32.xlu1 %v1022_v3, %s1514_s10 }
 0x222   : > { %v613_v14 = vadd.f32 %v586_v9, %v505_v48  ;;  %v1036_v9 = vld [vmem:[#allocation2 + $0x8e] sm:$0xff] }
 0x223   : > { %v774_v41 = vpop.permute.xlu0 %773  ;;  %v584_v53 = vpop.permute.xlu1 %583 }
 0x224   : > { %v2136_v19 = vadd.f32 %v774_v41, %v707_v16  ;;  %v612_v18 = vadd.f32 %v584_v53, %v504_v20  ;;  %v915_v16 = vld [vmem:[#allocation2 + $0x25] sm:$0xff]  ;;  %v929_v20 = vld [vmem:[#allocation2 + $0x95] sm:$0xff] }
 0x227   : > { %943 = vrot.lane.b32.xlu2 %v914_v8, %s1513_s9  ;;  %v1037_v8 = vld [vmem:[#allocation2 + $0x96] sm:$0xff] }
 0x229   : > { %v694_v10 = vpop.permute.xlu2 %693  ;;  %1133 = vrot.lane.b32.xlu0 %v1717_v22, %s1515_s11  ;;  %1161 = vrot.lane.b32.xlu1 %v1733_v27, %s1515_s11 }
 0x22a   : > { %v721_v2 = vadd.f32 %v694_v10, %v613_v14  ;;  %v2154_v14 = vld [vmem:[#allocation2 + $0x91] sm:$0xff] }
 0x22b   : > { %v2143_v3 = vpop.permute.xlu0 %785  ;;  %v692_v48 = vpop.permute.xlu1 %691 }
 0x22c   : > { %v720_v63 = vadd.f32 %v692_v48, %v612_v18  ;;  %v1225_v18 = vld [vmem:[%s2527_s2 + $0x78] sm:$0xff] }
 0x22d   : > { %1463 = vmatpush.msra.mxu3 %v1225_v18  ;;  %1230 = vmatpush.msra.mxu1 %v1225_v18  ;;  %v1023_v18 = vld [vmem:[#allocation2 + $0x26] sm:$0xff] }
 0x22f   : > { %1079 = vrot.lane.b32.xlu2 %v1036_v9, %s1514_s10 }
 0x231   : > { %v802_v41 = vpop.permute.xlu2 %801  ;;  %945 = vrot.lane.b32.xlu0 %v915_v16, %s1513_s9  ;;  %973 = vrot.lane.b32.xlu1 %v929_v20, %s1513_s9  ;;  %v1223_v16 = vld [vmem:[%s2527_s2 + $0x68] sm:$0xff] }
 0x232   : > { %v2148_v53 = vadd.f32 %v802_v41, %v721_v2  ;;  %v1224_v2 = vld [vmem:[%s2527_s2 + $0x70] sm:$0xff] }
 0x233   : > { %v2150_v22 = vpop.permute.xlu0 %791  ;;  %v2152_v27 = vpop.permute.xlu1 %793  ;;  %1464 = vmatpush.msra.mxu3 %v1224_v2  ;;  %1231 = vmatpush.msra.mxu1 %v1224_v2  ;;  %v2184_v2 = vld [vmem:[#allocation2 + $0x99] sm:$0xff] }
 0x234   : > { %2608 = vst [vmem:[#allocation65_spill] sm:$0xff] %v2148_v53 }
 0x235   : > { %1465 = vmatpush.msra.mxu3 %v1223_v16  ;;  %1232 = vmatpush.msra.mxu1 %v1223_v16 }
 0x237   : > { %865 = vrot.lane.b32.xlu2 %v2154_v14, %s1512_s8 }
 0x239   : > { %v2161_v10 = vpop.permute.xlu2 %835  ;;  %1081 = vrot.lane.b32.xlu0 %v1037_v8, %s1514_s10  ;;  %1135 = vrot.lane.b32.xlu1 %v1726_v26, %s1515_s11  ;;  %v1222_v26 = vld [vmem:[%s2527_s2 + $0x60] sm:$0xff]  ;;  %v1221_v8 = vld [vmem:[%s2527_s2 + $0x58] sm:$0xff] }
 0x23a   : > { %1466 = vmatpush.msra.mxu3 %v1222_v26  ;;  %1233 = vmatpush.msra.mxu1 %v1222_v26 }
 0x23b   : > { %v798_v48 = vpop.permute.xlu0 %797  ;;  %v800_v9 = vpop.permute.xlu1 %799 }
 0x23c   : > { %v2173_v20 = vadd.f32 %v798_v48, %v2098_v35  ;;  %v2175_v41 = vadd.f32 %v800_v9, %v720_v63  ;;  %v916_v35 = vld [vmem:[#allocation2 + $0x2d] sm:$0xff]  ;;  %1467 = vmatpush.msra.mxu3 %v1221_v8  ;;  %1234 = vmatpush.msra.mxu1 %v1221_v8  ;;  %v487_v9 = vadd.f32 %v1981_v49, %v2059_v59  ;;  %v1217_v49 = vld [vmem:[%s2527_s2 + $0x38] sm:$0xff] }
 0x23d   : > { %v1220_v48 = vld [vmem:[%s2527_s2 + $0x50] sm:$0xff] }
 0x23e   : > { %1468 = vmatpush.msra.mxu3 %v1220_v48  ;;  %1235 = vmatpush.msra.mxu1 %v1220_v48  ;;  %v595_v8 = vadd.f32 %v1994_v29, %v487_v9  ;;  %v1024_v29 = vld [vmem:[#allocation2 + $0x2e] sm:$0xff]  ;;  %v1038_v9 = vld [vmem:[#allocation2 + $0x9e] sm:$0xff] }
 0x23f   : > { %1053 = vrot.lane.b32.xlu2 %v1023_v18, %s1514_s10  ;;  %v1219_v18 = vld [vmem:[%s2527_s2 + $0x48] sm:$0xff] }
 0x240   : > { %1469 = vmatpush.msra.mxu3 %v1219_v18  ;;  %1236 = vmatpush.msra.mxu1 %v1219_v18  ;;  %v703_v59 = vadd.f32 %v2005_v21, %v595_v8  ;;  %v1216_v21 = vld [vmem:[%s2527_s2 + $0x30] sm:$0xff]  ;;  %v1215_v8 = vld [vmem:[%s2527_s2 + $0x28] sm:$0xff] }
 0x241   : > { %v2186_v63 = vpop.permute.xlu2 %841  ;;  %867 = vrot.lane.b32.xlu0 %v2184_v2, %s1512_s8  ;;  %947 = vrot.lane.b32.xlu1 %v916_v35, %s1513_s9  ;;  %v1218_v35 = vld [vmem:[%s2527_s2 + $0x40] sm:$0xff] }
 0x242   : > { %1470 = vmatpush.msra.mxu3 %v1218_v35  ;;  %1237 = vmatpush.msra.mxu1 %v1218_v35  ;;  %v811_v48 = vadd.f32 %v2016_v15, %v703_v59  ;;  %v486_v35 = vadd.f32 %v1964_v17, %v2057_v46  ;;  %v1214_v59 = vld [vmem:[%s2527_s2 + $0x20] sm:$0xff] }
 0x243   : > { %v2196_v16 = vpop.permute.xlu0 %831  ;;  %v2198_v26 = vpop.permute.xlu1 %833 }
 0x244   : > { %1471 = vmatpush.msra.mxu3 %v1217_v49  ;;  %1238 = vmatpush.msra.mxu1 %v1217_v49  ;;  %v930_v49 = vld [vmem:[#allocation2 + $0x9d] sm:$0xff] }
 0x246   : > { %1472 = vmatpush.msra.mxu3 %v1216_v21  ;;  %1239 = vmatpush.msra.mxu1 %v1216_v21 }
 0x247   : > { %1163 = vrot.lane.b32.xlu2 %v1750_v34, %s1515_s11 }
 0x248   : > { %1473 = vmatpush.msra.mxu3 %v1215_v8  ;;  %1240 = vmatpush.msra.mxu1 %v1215_v8 }
 0x249   : > { %v848_v53 = vpop.permute.xlu2 %847  ;;  %1055 = vrot.lane.b32.xlu0 %v1024_v29, %s1514_s10  ;;  %1083 = vrot.lane.b32.xlu1 %v1038_v9, %s1514_s10  ;;  %v2238_v29 = vld [vmem:[#allocation2 + $0xa1] sm:$0xff] }
 0x24a   : > { %v2219_v34 = vadd.f32 %v848_v53, %v811_v48  ;;  %v594_v53 = vadd.f32 %v1977_v12, %v486_v35  ;;  %1474 = vmatpush.msra.mxu3 %v1214_v59  ;;  %1241 = vmatpush.msra.mxu1 %v1214_v59  ;;  %v1213_v48 = vld [vmem:[%s2527_s2 + $0x18] sm:$0xff]  ;;  %v1212_v12 = vld [vmem:[%s2527_s2 + $0x10] sm:$0xff]  ;;  %v1210_v59 = vld [vmem:[%s2527_s2] sm:$0xff] }
 0x24b   : > { %v2221_v18 = vpop.permute.xlu0 %837  ;;  %v2223_v15 = vpop.permute.xlu1 %839 }
 0x24c   : > { %v702_v17 = vadd.f32 %v1988_v23, %v594_v53  ;;  %1475 = vmatpush.msra.mxu3 %v1213_v48  ;;  %1242 = vmatpush.msra.mxu1 %v1213_v48 }
 0x24e   : > { %v810_v9 = vadd.f32 %v2002_v25, %v702_v17  ;;  %1476 = vmatpush.msra.mxu3 %v1212_v12  ;;  %1243 = vmatpush.msra.mxu1 %v1212_v12  ;;  %v931_v25 = vld [vmem:[#allocation2 + $0xa5] sm:$0xff]  ;;  %v917_v12 = vld [vmem:[#allocation2 + $0x35] sm:$0xff] }
 0x24f   : > { %975 = vrot.lane.b32.xlu2 %v930_v49, %s1513_s9 }
 0x251   : > { %1165 = vrot.lane.b32.xlu0 %v1765_v42, %s1515_s11  ;;  %v854_v46 = vpop.permute.xlu2 %853  ;;  %869 = vrot.lane.b32.xlu1 %v2238_v29, %s1512_s8  ;;  %v1211_v42 = vld [vmem:[%s2527_s2 + $0x8] sm:$0xff] }
 0x252   : > { %v2250_v21 = vadd.f32 %v854_v46, %v2096_v40  ;;  %1477 = vmatpush.msra.mxu3 %v1211_v42  ;;  %1244 = vmatpush.msra.mxu1 %v1211_v42  ;;  %v1025_v40 = vld [vmem:[#allocation2 + $0x36] sm:$0xff] }
 0x253   : > { %v2252_v23 = vpop.permute.xlu0 %843  ;;  %v846_v8 = vpop.permute.xlu1 %845 }
 0x254   : > { %v2257_v35 = vadd.f32 %v846_v8, %v810_v9  ;;  %1478 = vmatpush.msra.mxu3 %v1210_v59  ;;  %1245 = vmatpush.msra.mxu1 %v1210_v59  ;;  %v816_v9 = vadd.f32 %v1757_v37, %v2108_v1  ;;  %v371_v8 = vld [vmem:[#allocation2 + $0x1] sm:$0xff] }
 0x255   : > { %v479_v59 = vadd.f32 %v1761_v39, %v371_v8  ;;  %v918_v1 = vld [vmem:[#allocation2 + $0x3d] sm:$0xff] }
 0x257   : > { %1137 = vrot.lane.b32.xlu2 %v1779_v47, %s1515_s11 }
 0x259   : > { %977 = vrot.lane.b32.xlu0 %v931_v25, %s1513_s9  ;;  %v860_v53 = vpop.permute.xlu2 %859  ;;  %1057 = vrot.lane.b32.xlu1 %v1025_v40, %s1514_s10  ;;  %v587_v40 = vadd.f32 %v1772_v44, %v479_v59 }
 0x25b   : > { %v850_v49 = vpop.permute.xlu0 %849  ;;  %v852_v48 = vpop.permute.xlu1 %851  ;;  %v695_v37 = vadd.f32 %v1787_v51, %v587_v40  ;;  %v2297_v51 = vld [vmem:[#allocation2 + $0xa9] sm:$0xff] }
 0x25c   : > { %v2267_v17 = vadd.f32 %v850_v49, %v2073_v0  ;;  %v2270_v46 = vadd.f32 %v852_v48, %v2081_v60  ;;  %v932_v49 = vld [vmem:[#allocation2 + $0xad] sm:$0xff] }
 0x25d   : > { %v803_v48 = vadd.f32 %v1800_v57, %v695_v37  ;;  %v1026_v37 = vld [vmem:[#allocation2 + $0x3e] sm:$0xff] }
 0x25f   : > { %949 = vrot.lane.b32.xlu2 %v917_v12, %s1513_s9  ;;  %v885_v8 = vadd.f32 %v2196_v16, %v803_v48 }
 0x261   : > { %1139 = vrot.lane.b32.xlu0 %v1793_v54, %s1515_s11  ;;  %v1048_v47 = vpop.permute.xlu2 %1047  ;;  %1167 = vrot.lane.b32.xlu1 %v1827_v6, %s1515_s11  ;;  %v1039_v54 = vld [vmem:[#allocation2 + $0xa6] sm:$0xff]  ;;  %v493_v6 = vadd.f32 %v1742_v31, %v2076_v28 }
 0x263   : > { %v856_v42 = vpop.permute.xlu0 %855  ;;  %v858_v0 = vpop.permute.xlu1 %857 }
 0x264   : > { %v2281_v60 = vadd.f32 %v856_v42, %v2136_v19  ;;  %v2283_v25 = vadd.f32 %v858_v0, %v816_v9  ;;  %v601_v19 = vadd.f32 %v1752_v36, %v493_v6  ;;  %v1040_v0 = vld [vmem:[#allocation2 + $0xae] sm:$0xff] }
 0x266   : > { %v709_v9 = vadd.f32 %v1767_v43, %v601_v19  ;;  %v480_v43 = vadd.f32 %v1813_v62, %v2030_v7 }
 0x267   : > { %1085 = vrot.lane.b32.xlu2 %v1039_v54, %s1514_s10 }
 0x268   : > { %v817_v31 = vadd.f32 %v1783_v50, %v709_v9  ;;  %v588_v6 = vadd.f32 %v1774_v45, %v480_v43  ;;  %v494_v45 = vadd.f32 %v1823_v5, %v2089_v32  ;;  %v1041_v9 = vld [vmem:[#allocation2 + $0xb6] sm:$0xff] }
 0x269   : > { %951 = vrot.lane.b32.xlu0 %v918_v1, %s1513_s9  ;;  %v1158_v39 = vpop.permute.xlu2 %1157  ;;  %979 = vrot.lane.b32.xlu1 %v932_v49, %s1513_s9  ;;  %v2308_v1 = vld [vmem:[#allocation2 + $0xb1] sm:$0xff] }
 0x26a   : > { %v899_v42 = vadd.f32 %v860_v53, %v817_v31  ;;  %v696_v7 = vadd.f32 %v1789_v52, %v588_v6 }
 0x26b   : > { %v940_v44 = vpop.permute.xlu0 %939  ;;  %v968_v12 = vpop.permute.xlu1 %967 }
 0x26c   : > { %v993_v28 = vadd.f32 %v940_v44, %v885_v8  ;;  %v1007_v57 = vadd.f32 %v968_v12, %v899_v42  ;;  %v804_v19 = vadd.f32 %v1802_v58, %v696_v7  ;;  %v1027_v12 = vld [vmem:[#allocation2 + $0x46] sm:$0xff]  ;;  %v2617_v7 = vld [vmem:[#allocation4_spill] sm:$0xff] }
 0x26e   : > { %v1101_v16 = vadd.f32 %v1048_v47, %v993_v28  ;;  %v886_v44 = vadd.f32 %v2198_v26, %v804_v19  ;;  %v933_v28 = vld [vmem:[#allocation2 + $0xb5] sm:$0xff]  ;;  %v2618_v19 = vld [vmem:[#allocation18_spill] sm:$0xff] }
 0x26f   : > { %871 = vrot.lane.b32.xlu2 %v2297_v51, %s1512_s8 }
 0x271   : > { %1087 = vrot.lane.b32.xlu0 %v1040_v0, %s1514_s10  ;;  %v970_v36 = vpop.permute.xlu2 %969  ;;  %1141 = vrot.lane.b32.xlu1 %v1805_v61, %s1515_s11  ;;  %v919_v61 = vld [vmem:[#allocation2 + $0x45] sm:$0xff]  ;;  %v2610_v0 = vld [vmem:[#allocation12_spill] sm:$0xff] }
 0x273   : > { %v1076_v50 = vpop.permute.xlu0 %1075  ;;  %v1130_v59 = vpop.permute.xlu1 %1129 }
 0x274   : > { %v1115_v40 = vadd.f32 %v1076_v50, %v1007_v57  ;;  %v1183_v54 = vadd.f32 %v1130_v59, %v1101_v16  ;;  %v2612_v59 = vld [vmem:[#allocation3_spill] sm:$0xff] }
 0x276   : > { %v1197_v53 = vadd.f32 %v1158_v39, %v1115_v40  ;;  %1246 = vmatmul.f32.vlgmr.msra.gmra.mxu1 %v1183_v54  ;;  %v602_v39 = vadd.f32 %v1838_v4, %v494_v45  ;;  %v2613_v54 = vld [vmem:[#allocation9_spill] sm:$0xff]  ;;  %v1028_v45 = vld [vmem:[#allocation2 + $0x4e] sm:$0xff] }
 0x277   : > { %1059 = vrot.lane.b32.xlu2 %v1026_v37, %s1514_s10  ;;  %v495_v6 = vadd.f32 %v2613_v54, %v2101_v13  ;;  %v2625_v54 = vld [vmem:[#allocation10_spill] sm:$0xff] }
 0x278   : > { %1288 = vmatmul.f32.vlgmr.msra.gmra.mxu3 %v1197_v53  ;;  %v710_v48 = vadd.f32 %v1853_v33, %v602_v39  ;;  %v2609_v33 = vld [vmem:[#allocation5_spill] sm:$0xff]  ;;  %v2614_v53 = vld [vmem:[#allocation11_spill] sm:$0xff] }
 0x279   : > { %873 = vrot.lane.b32.xlu0 %v2308_v1, %s1512_s8  ;;  %v1132_v62 = vpop.permute.xlu2 %1131  ;;  %953 = vrot.lane.b32.xlu1 %v919_v61, %s1513_s9  ;;  %v481_v26 = vadd.f32 %v2609_v33, %v2032_v11  ;;  %v603_v11 = vadd.f32 %v2614_v53, %v495_v6  ;;  %v2616_v61 = vld [vmem:[#allocation14_spill] sm:$0xff]  ;;  %v496_v6 = vadd.f32 %v2625_v54, %v2120_v56  ;;  %v2630_v56 = vld [vmem:[#allocation20_spill] sm:$0xff] }
 0x27a   : > { %v818_v5 = vadd.f32 %v1865_v55, %v710_v48  ;;  %v2611_v55 = vld [vmem:[#allocation56_spill] sm:$0xff] }
 0x27b   : > { %v862_v47 = vpop.permute.xlu0 %861  ;;  %v942_v49 = vpop.permute.xlu1 %941  ;;  %v589_v40 = vadd.f32 %v2612_v59, %v481_v26  ;;  %v2624_v59 = vld [vmem:[#allocation17_spill] sm:$0xff] }
 0x27c   : > { %v994_v32 = vadd.f32 %v942_v49, %v886_v44  ;;  %v900_v58 = vadd.f32 %v862_v47, %v818_v5  ;;  %v934_v49 = vld [vmem:[#allocation2 + $0xbd] sm:$0xff] }
 0x27d   : > { %v697_v47 = vadd.f32 %v2617_v7, %v589_v40  ;;  %v2628_v7 = vld [vmem:[#allocation25_spill] sm:$0xff] }
 0x27e   : > { %v1008_v42 = vadd.f32 %v970_v36, %v900_v58  ;;  %v2615_v36 = vld [vmem:[#allocation15_spill] sm:$0xff] }
 0x27f   : > { %1169 = vrot.lane.b32.xlu2 %v1843_v24, %s1515_s11 }
 0x281   : > { %1061 = vrot.lane.b32.xlu0 %v1027_v12, %s1514_s10  ;;  %v944_v52 = vpop.permute.xlu2 %943  ;;  %1089 = vrot.lane.b32.xlu1 %v1041_v9, %s1514_s10  ;;  %v2619_v12 = vld [vmem:[#allocation6_spill] sm:$0xff] }
 0x282   : > { %v805_v9 = vadd.f32 %v2619_v12, %v697_v47 }
 0x283   : > { %v1050_v4 = vpop.permute.xlu0 %1049  ;;  %v1078_v8 = vpop.permute.xlu1 %1077 }
 0x284   : > { %v1102_v31 = vadd.f32 %v1050_v4, %v994_v32  ;;  %v1116_v57 = vadd.f32 %v1078_v8, %v1008_v42  ;;  %v887_v32 = vadd.f32 %v2161_v10, %v805_v9  ;;  %v920_v8 = vld [vmem:[#allocation2 + $0x4d] sm:$0xff]  ;;  %v2631_v9 = vld [vmem:[#allocation61_spill] sm:$0xff] }
 0x286   : > { %v1184_v24 = vadd.f32 %v1132_v62, %v1102_v31  ;;  %v711_v62 = vadd.f32 %v2616_v61, %v603_v11  ;;  %v995_v58 = vadd.f32 %v944_v52, %v887_v32  ;;  %v2620_v31 = vld [vmem:[#allocation19_spill] sm:$0xff]  ;;  %v1042_v52 = vld [vmem:[#allocation2 + $0xbe] sm:$0xff] }
 0x287   : > { %981 = vrot.lane.b32.xlu2 %v933_v28, %s1513_s9  ;;  %v935_v11 = vld [vmem:[#allocation2 + $0xc5] sm:$0xff]  ;;  %v2627_v61 = vld [vmem:[#allocation13_spill] sm:$0xff] }
 0x288   : > { %1249 = vmatmul.f32.gmra.mxu1 %v1184_v24  ;;  %v819_v13 = vadd.f32 %v2618_v19, %v711_v62  ;;  %v2621_v24 = vld [vmem:[#allocation30_spill] sm:$0xff]  ;;  %v604_v62 = vadd.f32 %v2627_v61, %v496_v6  ;;  %v2629_v19 = vld [vmem:[#allocation16_spill] sm:$0xff] }
 0x289   : > { %1171 = vrot.lane.b32.xlu0 %v2610_v0, %s1515_s11  ;;  %v1080_v43 = vpop.permute.xlu2 %1079  ;;  %875 = vrot.lane.b32.xlu1 %v2611_v55, %s1512_s8  ;;  %v2622_v55 = vld [vmem:[#allocation59_spill] sm:$0xff]  ;;  %v2637_v6 = vld [vmem:[#allocation28_spill] sm:$0xff]  ;;  %v2640_v61 = vld [vmem:[#allocation34_spill] sm:$0xff] }
 0x28a   : > { %v1043_v32 = vld [vmem:[#allocation2 + $0xc6] sm:$0xff] }
 0x28b   : > { %v1160_v16 = vpop.permute.xlu0 %1159  ;;  %v864_v50 = vpop.permute.xlu1 %863 }
 0x28c   : > { %v1198_v37 = vadd.f32 %v1160_v16, %v1116_v57  ;;  %v901_v5 = vadd.f32 %v864_v50, %v819_v13  ;;  %v2623_v57 = vld [vmem:[#allocation7_spill] sm:$0xff]  ;;  %v712_v13 = vadd.f32 %v2629_v19, %v604_v62 }
 0x28d   : > { %v482_v16 = vadd.f32 %v2623_v57, %v2622_v55  ;;  %v2633_v55 = vld [vmem:[#allocation57_spill] sm:$0xff] }
 0x28e   : > { %1291 = vmatmul.f32.gmra.mxu3 %v1198_v37  ;;  %v2626_v37 = vld [vmem:[#allocation21_spill] sm:$0xff] }
 0x28f   : > { %1143 = vrot.lane.b32.xlu2 %v2615_v36, %s1515_s11  ;;  %v590_v40 = vadd.f32 %v2624_v59, %v482_v16  ;;  %v922_v16 = vld [vmem:[#allocation2 + $0x5d] sm:$0xff] }
 0x291   : > { %983 = vrot.lane.b32.xlu0 %v934_v49, %s1513_s9  ;;  %v866_v39 = vpop.permute.xlu2 %865  ;;  %1063 = vrot.lane.b32.xlu1 %v1028_v45, %s1514_s10  ;;  %v698_v53 = vadd.f32 %v2626_v37, %v590_v40  ;;  %v497_v37 = vadd.f32 %v2637_v6, %v2154_v14 }
 0x293   : > { %v972_v48 = vpop.permute.xlu0 %971  ;;  %v1052_v44 = vpop.permute.xlu1 %1051  ;;  %v806_v47 = vadd.f32 %v2628_v7, %v698_v53  ;;  %v2638_v53 = vld [vmem:[#allocation29_spill] sm:$0xff] }
 0x294   : > { %v1009_v4 = vadd.f32 %v972_v48, %v901_v5  ;;  %v1103_v33 = vadd.f32 %v1052_v44, %v995_v58  ;;  %v820_v44 = vadd.f32 %v2630_v56, %v712_v13 }
 0x295   : > { %v888_v48 = vadd.f32 %v2221_v18, %v806_v47  ;;  %v1030_v47 = vld [vmem:[#allocation2 + $0x5e] sm:$0xff] }
 0x296   : > { %v1117_v26 = vadd.f32 %v1080_v43, %v1009_v4  ;;  %v921_v43 = vld [vmem:[#allocation2 + $0x55] sm:$0xff]  ;;  %v902_v5 = vadd.f32 %v866_v39, %v820_v44 }
 0x297   : > { %955 = vrot.lane.b32.xlu2 %v920_v8, %s1513_s9  ;;  %v2632_v8 = vld [vmem:[#allocation23_spill] sm:$0xff]  ;;  %v2634_v39 = vld [vmem:[#allocation8_spill] sm:$0xff] }
 0x298   : > { %v483_v57 = vadd.f32 %v2634_v39, %v2633_v55  ;;  %v2648_v39 = vld [vmem:[#allocation27_spill] sm:$0xff] }
 0x299   : > { %1145 = vrot.lane.b32.xlu0 %v2620_v31, %s1515_s11  ;;  %v1054_v28 = vpop.permute.xlu2 %1053  ;;  %1173 = vrot.lane.b32.xlu1 %v2621_v24, %s1515_s11 }
 0x29b   : > { %v1134_v42 = vpop.permute.xlu0 %1133  ;;  %v1162_v0 = vpop.permute.xlu1 %1161 }
 0x29c   : > { %v1185_v10 = vadd.f32 %v1134_v42, %v1103_v33  ;;  %v1199_v50 = vadd.f32 %v1162_v0, %v1117_v26  ;;  %v1029_v42 = vld [vmem:[#allocation2 + $0x56] sm:$0xff] }
 0x29e   : > { %1252 = vmatmul.f32.gmra.mxu1 %v1185_v10  ;;  %1294 = vmatmul.f32.gmra.mxu3 %v1199_v50 }
 0x29f   : > { %1091 = vrot.lane.b32.xlu2 %v1042_v52, %s1514_s10  ;;  %v2636_v52 = vld [vmem:[#allocation26_spill] sm:$0xff] }
 0x2a1   : > { %957 = vrot.lane.b32.xlu0 %v921_v43, %s1513_s9  ;;  %v1164_v36 = vpop.permute.xlu2 %1163  ;;  %985 = vrot.lane.b32.xlu1 %v935_v11, %s1513_s9  ;;  %v2639_v11 = vld [vmem:[#allocation32_spill] sm:$0xff] }
 0x2a3   : > { %v946_v49 = vpop.permute.xlu0 %945  ;;  %v974_v45 = vpop.permute.xlu1 %973 }
 0x2a4   : > { %v996_v12 = vadd.f32 %v946_v49, %v888_v48  ;;  %v1010_v58 = vadd.f32 %v974_v45, %v902_v5  ;;  %v1044_v49 = vld [vmem:[#allocation2 + $0xce] sm:$0xff] }
 0x2a5   : > { %v2642_v5 = vld [vmem:[#allocation48_spill] sm:$0xff] }
 0x2a6   : > { %v1104_v31 = vadd.f32 %v1054_v28, %v996_v12  ;;  %v2635_v28 = vld [vmem:[#allocation22_spill] sm:$0xff]  ;;  %v936_v12 = vld [vmem:[#allocation2 + $0xcd] sm:$0xff] }
 0x2a7   : > { %877 = vrot.lane.b32.xlu2 %v2631_v9, %s1512_s8  ;;  %v591_v50 = vadd.f32 %v2635_v28, %v483_v57  ;;  %v1031_v28 = vld [vmem:[#allocation2 + $0x66] sm:$0xff] }
 0x2a9   : > { %1093 = vrot.lane.b32.xlu0 %v1043_v32, %s1514_s10  ;;  %v976_v4 = vpop.permute.xlu2 %975  ;;  %1147 = vrot.lane.b32.xlu1 %v2632_v8, %s1515_s11  ;;  %v699_v54 = vadd.f32 %v2636_v52, %v591_v50 }
 0x2ab   : > { %v1082_v24 = vpop.permute.xlu0 %1081  ;;  %v1136_v33 = vpop.permute.xlu1 %1135  ;;  %v807_v43 = vadd.f32 %v2638_v53, %v699_v54 }
 0x2ac   : > { %v1118_v26 = vadd.f32 %v1082_v24, %v1010_v58  ;;  %v1186_v18 = vadd.f32 %v1136_v33, %v1104_v31  ;;  %v2643_v31 = vld [vmem:[#allocation33_spill] sm:$0xff] }
 0x2ad   : > { %v889_v7 = vadd.f32 %v2223_v15, %v807_v43  ;;  %v498_v24 = vadd.f32 %v2643_v31, %v2184_v2  ;;  %v2650_v2 = vld [vmem:[#allocation31_spill] sm:$0xff]  ;;  %v938_v31 = vld [vmem:[#allocation2 + $0xdd] sm:$0xff] }
 0x2ae   : > { %v1200_v0 = vadd.f32 %v1164_v36, %v1118_v26  ;;  %1255 = vmatmul.f32.gmra.mxu1 %v1186_v18  ;;  %v605_v36 = vadd.f32 %v2639_v11, %v497_v37  ;;  %v2644_v26 = vld [vmem:[#allocation58_spill] sm:$0xff]  ;;  %v2645_v18 = vld [vmem:[#allocation24_spill] sm:$0xff]  ;;  %v2652_v37 = vld [vmem:[#allocation35_spill] sm:$0xff] }
 0x2af   : > { %1065 = vrot.lane.b32.xlu2 %v1029_v42, %s1514_s10  ;;  %v484_v42 = vadd.f32 %v2645_v18, %v2644_v26  ;;  %v2661_v18 = vld [vmem:[#allocation47_spill] sm:$0xff] }
 0x2b0   : > { %1297 = vmatmul.f32.gmra.mxu3 %v1200_v0  ;;  %v2646_v0 = vld [vmem:[#allocation37_spill] sm:$0xff] }
 0x2b1   : > { %879 = vrot.lane.b32.xlu0 %v2131_v38, %s1512_s8  ;;  %v1138_v10 = vpop.permute.xlu2 %1137  ;;  %959 = vrot.lane.b32.xlu1 %v922_v16, %s1513_s9  ;;  %v2641_v38 = vld [vmem:[#allocation36_spill] sm:$0xff]  ;;  %v606_v55 = vadd.f32 %v2646_v0, %v498_v24  ;;  %v592_v57 = vadd.f32 %v2648_v39, %v484_v42 }
 0x2b2   : > { %v713_v62 = vadd.f32 %v2641_v38, %v605_v36  ;;  %v2649_v16 = vld [vmem:[#allocation40_spill] sm:$0xff] }
 0x2b3   : > { %v868_v59 = vpop.permute.xlu0 %867  ;;  %v948_v40 = vpop.permute.xlu1 %947 }
 0x2b4   : > { %v821_v14 = vadd.f32 %v2143_v3, %v713_v62  ;;  %v997_v19 = vadd.f32 %v948_v40, %v889_v7  ;;  %v2651_v40 = vld [vmem:[#allocation64_spill] sm:$0xff] }
 0x2b5   : > { %v2653_v62 = vld [vmem:[#allocation44_spill] sm:$0xff] }
 0x2b6   : > { %v903_v56 = vadd.f32 %v868_v59, %v821_v14  ;;  %v700_v59 = vadd.f32 %v2650_v2, %v592_v57  ;;  %v1046_v2 = vld [vmem:[#allocation2 + $0xde] sm:$0xff] }
 0x2b7   : > { %1175 = vrot.lane.b32.xlu2 %v2640_v61, %s1515_s11  ;;  %v923_v61 = vld [vmem:[#allocation2 + $0x65] sm:$0xff] }
 0x2b8   : > { %v1011_v15 = vadd.f32 %v976_v4, %v903_v56  ;;  %v2647_v4 = vld [vmem:[#allocation41_spill] sm:$0xff]  ;;  %v808_v53 = vadd.f32 %v2652_v37, %v700_v59  ;;  %v2656_v56 = vld [vmem:[#allocation39_spill] sm:$0xff] }
 0x2b9   : > { %1067 = vrot.lane.b32.xlu0 %v1030_v47, %s1514_s10  ;;  %v950_v45 = vpop.permute.xlu2 %949  ;;  %1095 = vrot.lane.b32.xlu1 %v1044_v49, %s1514_s10  ;;  %v2654_v47 = vld [vmem:[#allocation54_spill] sm:$0xff] }
 0x2ba   : > { %v890_v11 = vadd.f32 %v2186_v63, %v808_v53 }
 0x2bb   : > { %v1056_v13 = vpop.permute.xlu0 %1055  ;;  %v1084_v48 = vpop.permute.xlu1 %1083 }
 0x2bc   : > { %v1105_v44 = vadd.f32 %v1056_v13, %v997_v19  ;;  %v1119_v8 = vadd.f32 %v1084_v48, %v1011_v15  ;;  %v998_v38 = vadd.f32 %v950_v45, %v890_v11  ;;  %v2655_v48 = vld [vmem:[#allocation60_spill] sm:$0xff] }
 0x2bd   : > { %v1045_v45 = vld [vmem:[#allocation2 + $0xd6] sm:$0xff] }
 0x2be   : > { %v1187_v9 = vadd.f32 %v1138_v10, %v1105_v44  ;;  %v937_v10 = vld [vmem:[#allocation2 + $0xd5] sm:$0xff]  ;;  %v485_v44 = vadd.f32 %v2656_v56, %v2655_v48 }
 0x2bf   : > { %987 = vrot.lane.b32.xlu2 %v936_v12, %s1513_s9 }
 0x2c0   : > { %1258 = vmatmul.f32.gmra.mxu1 %v1187_v9  ;;  %v2657_v9 = vld [vmem:[#allocation43_spill] sm:$0xff] }
 0x2c1   : > { %1177 = vrot.lane.b32.xlu0 %v2642_v5, %s1515_s11  ;;  %v1086_v32 = vpop.permute.xlu2 %1085  ;;  %881 = vrot.lane.b32.xlu1 %v2126_v30, %s1512_s8  ;;  %v714_v30 = vadd.f32 %v2649_v16, %v606_v55  ;;  %v593_v15 = vadd.f32 %v2657_v9, %v485_v44  ;;  %v2658_v5 = vld [vmem:[#allocation38_spill] sm:$0xff] }
 0x2c2   : > { %v2441_v44 = vld [vmem:[%s2528_s3] ss:$0 sm:$0xff] }
 0x2c3   : > { %v1166_v3 = vpop.permute.xlu0 %1165  ;;  %v870_v58 = vpop.permute.xlu1 %869  ;;  %v822_v52 = vadd.f32 %v2651_v40, %v714_v30  ;;  %v1497_v40 = vld [vmem:[#allocation2 + $0x6f] sm:$0xff] }
 0x2c4   : > { %v1201_v33 = vadd.f32 %v1166_v3, %v1119_v8  ;;  %v499_v8 = vadd.f32 %v2658_v5, %v2238_v29  ;;  %v2659_v3 = vld [vmem:[#allocation46_spill] sm:$0xff] }
 0x2c5   : > { %v904_v43 = vadd.f32 %v870_v58, %v822_v52  ;;  %v701_v58 = vadd.f32 %v2659_v3, %v593_v15  ;;  %v2663_v29 = vld [vmem:[#allocation62_spill] sm:$0xff] }
 0x2c6   : > { %1300 = vmatmul.f32.gmra.mxu3 %v1201_v33  ;;  %v2660_v33 = vld [vmem:[#allocation42_spill] sm:$0xff] }
 0x2c7   : > { %1149 = vrot.lane.b32.xlu2 %v2647_v4, %s1515_s11  ;;  %v607_v26 = vadd.f32 %v2660_v33, %v499_v8  ;;  %v809_v42 = vadd.f32 %v2661_v18, %v701_v58  ;;  %v2662_v4 = vld [vmem:[#allocation45_spill] sm:$0xff] }
 0x2c8   : > { %v1498_v58 = vld [vmem:[#allocation2 + $0x77] sm:$0xff] }
 0x2c9   : > { %989 = vrot.lane.b32.xlu0 %v937_v10, %s1513_s9  ;;  %v872_v50 = vpop.permute.xlu2 %871  ;;  %1069 = vrot.lane.b32.xlu1 %v1031_v28, %s1514_s10  ;;  %v715_v39 = vadd.f32 %v2662_v4, %v607_v26  ;;  %v891_v57 = vadd.f32 %v2252_v23, %v809_v42  ;;  %v830_v10 = vld [vmem:[#allocation2 + $0xd9] sm:$0xff] }
 0x2cb   : > { %v978_v54 = vpop.permute.xlu0 %977  ;;  %v1058_v6 = vpop.permute.xlu1 %1057  ;;  %v823_v16 = vadd.f32 %v2663_v29, %v715_v39  ;;  %v2668_v39 = vld [vmem:[#allocation53_spill] sm:$0xff]  ;;  %v2669_v29 = vld [vmem:[#allocation55_spill] sm:$0xff] }
 0x2cc   : > { %v1012_v36 = vadd.f32 %v978_v54, %v904_v43  ;;  %v1106_v49 = vadd.f32 %v1058_v6, %v998_v38  ;;  %v1032_v43 = vld [vmem:[#allocation2 + $0x6e] sm:$0xff] }
 0x2cd   : > { %v905_v28 = vadd.f32 %v872_v50, %v823_v16  ;;  %v925_v50 = vld [vmem:[#allocation2 + $0x75] sm:$0xff] }
 0x2ce   : > { %v1120_v14 = vadd.f32 %v1086_v32, %v1012_v36  ;;  %v924_v32 = vld [vmem:[#allocation2 + $0x6d] sm:$0xff]  ;;  %v1033_v36 = vld [vmem:[#allocation2 + $0x76] sm:$0xff] }
 0x2cf   : > { %961 = vrot.lane.b32.xlu2 %v923_v61, %s1513_s9 }
 0x2d1   : > { %1151 = vrot.lane.b32.xlu0 %v2653_v62, %s1515_s11  ;;  %v1060_v7 = vpop.permute.xlu2 %1059  ;;  %1179 = vrot.lane.b32.xlu1 %v2654_v47, %s1515_s11 }
 0x2d3   : > { %v1140_v19 = vpop.permute.xlu0 %1139  ;;  %v1168_v13 = vpop.permute.xlu1 %1167 }
 0x2d4   : > { %v1188_v63 = vadd.f32 %v1140_v19, %v1106_v49  ;;  %v1202_v12 = vadd.f32 %v1168_v13, %v1120_v14  ;;  %v2665_v49 = vld [vmem:[#allocation50_spill] sm:$0xff]  ;;  %v2666_v13 = vld [vmem:[#allocation52_spill] sm:$0xff] }
 0x2d5   : > { %v1128_v19 = vld [vmem:[#allocation2 + $0xdf] sm:$0xff] }
 0x2d6   : > { %1261 = vmatmul.f32.gmra.mxu1 %v1188_v63  ;;  %1303 = vmatmul.f32.gmra.mxu3 %v1202_v12 }
 0x2d7   : > { %1097 = vrot.lane.b32.xlu2 %v1045_v45, %s1514_s10 }
 0x2d9   : > { %963 = vrot.lane.b32.xlu0 %v924_v32, %s1513_s9  ;;  %v1170_v24 = vpop.permute.xlu2 %1169  ;;  %991 = vrot.lane.b32.xlu1 %v938_v31, %s1513_s9 }
 0x2db   : > { %v952_v0 = vpop.permute.xlu0 %951  ;;  %v980_v55 = vpop.permute.xlu1 %979 }
 0x2dc   : > { %v999_v30 = vadd.f32 %v952_v0, %v891_v57  ;;  %v1013_v52 = vadd.f32 %v980_v55, %v905_v28  ;;  %v2667_v0 = vld [vmem:[#allocation51_spill] sm:$0xff] }
 0x2dd   : > { %v501_v55 = vadd.f32 %v2667_v0, %v2308_v1 }
 0x2de   : > { %v1107_v54 = vadd.f32 %v1060_v7, %v999_v30  ;;  %v2664_v7 = vld [vmem:[#allocation49_spill] sm:$0xff] }
 0x2df   : > { %883 = vrot.lane.b32.xlu2 %v830_v10, %s1512_s8  ;;  %v500_v47 = vadd.f32 %v2664_v7, %v2297_v51  ;;  %v609_v57 = vadd.f32 %v2668_v39, %v501_v55 }
 0x2e1   : > { %1099 = vrot.lane.b32.xlu0 %v1046_v2, %s1514_s10  ;;  %v982_v59 = vpop.permute.xlu2 %981  ;;  %1153 = vrot.lane.b32.xlu1 %v1497_v40, %s1515_s11  ;;  %v608_v14 = vadd.f32 %v2665_v49, %v500_v47  ;;  %v717_v16 = vadd.f32 %v2669_v29, %v609_v57  ;;  %v2670_v49 = vld [vmem:[#allocation63_spill] sm:$0xff] }
 0x2e3   : > { %v1088_v6 = vpop.permute.xlu0 %1087  ;;  %v1142_v37 = vpop.permute.xlu1 %1141  ;;  %v716_v48 = vadd.f32 %v2666_v13, %v608_v14  ;;  %v825_v10 = vadd.f32 %v2152_v27, %v717_v16 }
 0x2e4   : > { %v1121_v53 = vadd.f32 %v1088_v6, %v1013_v52  ;;  %v1189_v23 = vadd.f32 %v1142_v37, %v1107_v54 }
 0x2e5   : > { %v824_v63 = vadd.f32 %v2150_v22, %v716_v48 }
 0x2e6   : > { %v1203_v11 = vadd.f32 %v1170_v24, %v1121_v53  ;;  %1264 = vmatmul.f32.gmra.mxu1 %v1189_v23 }
 0x2e7   : > { %1071 = vrot.lane.b32.xlu2 %v1032_v43, %s1514_s10 }
 0x2e8   : > { %1306 = vmatmul.f32.gmra.mxu3 %v1203_v11 }
 0x2e9   : > { %965 = vrot.lane.b32.xlu0 %v925_v50, %s1513_s9  ;;  %v1144_v61 = vpop.permute.xlu2 %1143  ;;  %1073 = vrot.lane.b32.xlu1 %v1033_v36, %s1514_s10 }
 0x2eb   : > { %v874_v38 = vpop.permute.xlu0 %873  ;;  %v954_v62 = vpop.permute.xlu1 %953 }
 0x2ec   : > { %v1000_v12 = vadd.f32 %v954_v62, %v2257_v35  ;;  %v906_v51 = vadd.f32 %v874_v38, %v824_v63 }
 0x2ee   : > { %v1014_v35 = vadd.f32 %v982_v59, %v906_v51 }
 0x2ef   : > { %1181 = vrot.lane.b32.xlu2 %v1128_v19, %s1515_s11 }
 0x2f1   : > { %v956_v56 = vpop.permute.xlu2 %955 }
 0x2f2   : > { %v1001_v1 = vadd.f32 %v956_v56, %v2219_v34 }
 0x2f3   : > { %v1062_v9 = vpop.permute.xlu0 %1061  ;;  %v1090_v15 = vpop.permute.xlu1 %1089 }
 0x2f4   : > { %v1108_v45 = vadd.f32 %v1062_v9, %v1000_v12  ;;  %v1247_v5 = vpop.f32.mrf.mxu1  ;;  %v1122_v31 = vadd.f32 %v1090_v15, %v1014_v35 }
 0x2f5   : > { %v1248_v8 = vadd.f32 %v2441_v44, %v1247_v5 }
 0x2f6   : > { %v1190_v3 = vadd.f32 %v1144_v61, %v1108_v45 }
 0x2f7   : > { %1155 = vrot.lane.b32.xlu2 %v1498_v58, %s1515_s11  ;;  %v1328_v22 = vmax.f32 %v1248_v8, 0.0 }
 0x2f8   : > { %1267 = vmatmul.f32.gmra.mxu1 %v1190_v3 }
 0x2f9   : > { %1355 = vst [vmem:[%s2451_s28] sm:$0xff] %v1328_v22  ;;  %v1092_v32 = vpop.permute.xlu2 %1091 }
 0x2fb   : > { %v1172_v24 = vpop.permute.xlu0 %1171  ;;  %v1289_v33 = vpop.f32.mrf.mxu3 }
 0x2fc   : > { %v1204_v26 = vadd.f32 %v1172_v24, %v1122_v31  ;;  %v1290_v18 = vadd.f32 %v2441_v44, %v1289_v33  ;;  %v876_v42 = vpop.permute.xlu1 %875 }
 0x2fd   : > { %v907_v59 = vadd.f32 %v876_v42, %v825_v10 }
 0x2fe   : > { %v1342_v4 = vmax.f32 %v1290_v18, 0.0  ;;  %1309 = vmatmul.f32.gmra.mxu3 %v1204_v26 }
 0x300   : > { %1369 = vst [vmem:[%s2451_s28 + $0x70] sm:$0xff] %v1342_v4 }
 0x301   : > { %v878_v30 = vpop.permute.xlu2 %877 }
 0x302   : > { %v908_v14 = vadd.f32 %v878_v30, %v2670_v49 }
 0x303   : > { %v984_v28 = vpop.permute.xlu0 %983 }
 0x304   : > { %v1064_v2 = vpop.permute.xlu1 %1063  ;;  %v1015_v54 = vadd.f32 %v984_v28, %v907_v59 }
 0x305   : > { %v1250_v40 = vpop.f32.mrf.mxu1  ;;  %v1109_v53 = vadd.f32 %v1064_v2, %v1001_v1 }
 0x306   : > { %v1251_v52 = vadd.f32 %v2441_v44, %v1250_v40  ;;  %v1123_v43 = vadd.f32 %v1092_v32, %v1015_v54 }
 0x308   : > { %v1329_v6 = vmax.f32 %v1251_v52, 0.0 }
 0x309   : > { %v1066_v37 = vpop.permute.xlu2 %1065 }
 0x30a   : > { %1356 = vst [vmem:[%s2451_s28 + $0x8] sm:$0xff] %v1329_v6 }
 0x30b   : > { %v1146_v23 = vpop.permute.xlu0 %1145 }
 0x30c   : > { %v1191_v11 = vadd.f32 %v1146_v23, %v1109_v53  ;;  %v1174_v50 = vpop.permute.xlu1 %1173 }
 0x30d   : > { %v1205_v36 = vadd.f32 %v1174_v50, %v1123_v43 }
 0x30e   : > { %1270 = vmatmul.f32.gmra.mxu1 %v1191_v11 }
 0x30f   : > { %1312 = vmatmul.f32.gmra.mxu3 %v1205_v36 }
 0x311   : > { %v1292_v27 = vpop.f32.mrf.mxu3  ;;  %v1176_v61 = vpop.permute.xlu2 %1175 }
 0x312   : > { %v1293_v38 = vadd.f32 %v2441_v44, %v1292_v27 }
 0x313   : > { %v958_v62 = vpop.permute.xlu0 %957 }
 0x314   : > { %v1343_v7 = vmax.f32 %v1293_v38, 0.0  ;;  %v986_v47 = vpop.permute.xlu1 %985  ;;  %v1002_v34 = vadd.f32 %v958_v62, %v2267_v17 }
 0x315   : > { %v1016_v13 = vadd.f32 %v986_v47, %v908_v14 }
 0x316   : > { %1370 = vst [vmem:[%s2451_s28 + $0x78] sm:$0xff] %v1343_v7  ;;  %v1110_v63 = vadd.f32 %v1066_v37, %v1002_v34  ;;  %v2671_v34 = vld [vmem:[#allocation65_spill] sm:$0xff] }
 0x319   : > { %v988_v19 = vpop.permute.xlu2 %987 }
 0x31b   : > { %v1094_v48 = vpop.permute.xlu0 %1093  ;;  %v1253_v56 = vpop.f32.mrf.mxu1 }
 0x31c   : > { %v1124_v12 = vadd.f32 %v1094_v48, %v1016_v13  ;;  %v1254_v9 = vadd.f32 %v2441_v44, %v1253_v56  ;;  %v1148_v15 = vpop.permute.xlu1 %1147 }
 0x31d   : > { %v1192_v51 = vadd.f32 %v1148_v15, %v1110_v63 }
 0x31e   : > { %v1330_v45 = vmax.f32 %v1254_v9, 0.0  ;;  %v1206_v5 = vadd.f32 %v1176_v61, %v1124_v12 }
 0x31f   : > { %1273 = vmatmul.f32.gmra.mxu1 %v1192_v51 }
 0x320   : > { %1357 = vst [vmem:[%s2451_s28 + $0x10] sm:$0xff] %v1330_v45  ;;  %1315 = vmatmul.f32.gmra.mxu3 %v1206_v5 }
 0x321   : > { %v1295_v8 = vpop.f32.mrf.mxu3  ;;  %v1150_v3 = vpop.permute.xlu2 %1149 }
 0x322   : > { %v1296_v17 = vadd.f32 %v2441_v44, %v1295_v8 }
 0x323   : > { %v880_v58 = vpop.permute.xlu0 %879 }
 0x324   : > { %v1344_v22 = vmax.f32 %v1296_v17, 0.0  ;;  %v960_v35 = vpop.permute.xlu1 %959  ;;  %v909_v33 = vadd.f32 %v880_v58, %v2173_v20 }
 0x325   : > { %v1003_v32 = vadd.f32 %v960_v35, %v2270_v46 }
 0x326   : > { %1371 = vst [vmem:[%s2451_s28 + $0x80] sm:$0xff] %v1344_v22  ;;  %v1017_v39 = vadd.f32 %v988_v19, %v909_v33 }
 0x329   : > { %v962_v0 = vpop.permute.xlu2 %961 }
 0x32a   : > { %v1004_v6 = vadd.f32 %v962_v0, %v2250_v21 }
 0x32b   : > { %v1068_v31 = vpop.permute.xlu0 %1067  ;;  %v1256_v24 = vpop.f32.mrf.mxu1 }
 0x32c   : > { %v1111_v26 = vadd.f32 %v1068_v31, %v1003_v32  ;;  %v1096_v18 = vpop.permute.xlu1 %1095  ;;  %v1257_v42 = vadd.f32 %v2441_v44, %v1256_v24 }
 0x32d   : > { %v1125_v57 = vadd.f32 %v1096_v18, %v1017_v39 }
 0x32e   : > { %v1193_v55 = vadd.f32 %v1150_v3, %v1111_v26  ;;  %v1331_v4 = vmax.f32 %v1257_v42, 0.0 }
 0x330   : > { %1276 = vmatmul.f32.gmra.mxu1 %v1193_v55  ;;  %1358 = vst [vmem:[%s2451_s28 + $0x18] sm:$0xff] %v1331_v4 }
 0x331   : > { %v1098_v28 = vpop.permute.xlu2 %1097 }
 0x333   : > { %v1178_v29 = vpop.permute.xlu0 %1177  ;;  %v1298_v16 = vpop.f32.mrf.mxu3 }
 0x334   : > { %v1207_v30 = vadd.f32 %v1178_v29, %v1125_v57  ;;  %v1299_v46 = vadd.f32 %v2441_v44, %v1298_v16  ;;  %v882_v10 = vpop.permute.xlu1 %881 }
 0x335   : > { %v910_v40 = vadd.f32 %v882_v10, %v2175_v41 }
 0x336   : > { %v1345_v20 = vmax.f32 %v1299_v46, 0.0  ;;  %1318 = vmatmul.f32.gmra.mxu3 %v1207_v30 }
 0x338   : > { %1372 = vst [vmem:[%s2451_s28 + $0x88] sm:$0xff] %v1345_v20 }
 0x339   : > { %v884_v53 = vpop.permute.xlu2 %883 }
 0x33a   : > { %v911_v49 = vadd.f32 %v884_v53, %v2671_v34 }
 0x33b   : > { %v990_v2 = vpop.permute.xlu0 %989 }
 0x33c   : > { %v1070_v59 = vpop.permute.xlu1 %1069  ;;  %v1018_v1 = vadd.f32 %v990_v2, %v910_v40 }
 0x33d   : > { %v1259_v52 = vpop.f32.mrf.mxu1  ;;  %v1112_v23 = vadd.f32 %v1070_v59, %v1004_v6 }
 0x33e   : > { %v1260_v54 = vadd.f32 %v2441_v44, %v1259_v52  ;;  %v1126_v11 = vadd.f32 %v1098_v28, %v1018_v1 }
 0x340   : > { %v1332_v37 = vmax.f32 %v1260_v54, 0.0 }
 0x341   : > { %v1072_v38 = vpop.permute.xlu2 %1071 }
 0x342   : > { %1359 = vst [vmem:[%s2451_s28 + $0x20] sm:$0xff] %v1332_v37 }
 0x343   : > { %v1152_v43 = vpop.permute.xlu0 %1151 }
 0x344   : > { %v1194_v50 = vadd.f32 %v1152_v43, %v1112_v23  ;;  %v1180_v36 = vpop.permute.xlu1 %1179 }
 0x345   : > { %v1208_v27 = vadd.f32 %v1180_v36, %v1126_v11 }
 0x346   : > { %1279 = vmatmul.f32.gmra.mxu1 %v1194_v50 }
 0x347   : > { %1321 = vmatmul.f32.gmra.mxu3 %v1208_v27 }
 0x349   : > { %v1301_v61 = vpop.f32.mrf.mxu3  ;;  %v1182_v9 = vpop.permute.xlu2 %1181 }
 0x34a   : > { %v1302_v41 = vadd.f32 %v2441_v44, %v1301_v61 }
 0x34b   : > { %v964_v62 = vpop.permute.xlu0 %963 }
 0x34c   : > { %v1346_v7 = vmax.f32 %v1302_v41, 0.0  ;;  %v992_v47 = vpop.permute.xlu1 %991  ;;  %v1005_v21 = vadd.f32 %v964_v62, %v2281_v60 }
 0x34d   : > { %v1019_v14 = vadd.f32 %v992_v47, %v911_v49 }
 0x34e   : > { %1373 = vst [vmem:[%s2451_s28 + $0x90] sm:$0xff] %v1346_v7  ;;  %v1113_v48 = vadd.f32 %v1072_v38, %v1005_v21 }
 0x351   : > { %v1156_v35 = vpop.permute.xlu2 %1155 }
 0x353   : > { %v1100_v19 = vpop.permute.xlu0 %1099  ;;  %v1262_v13 = vpop.f32.mrf.mxu1 }
 0x354   : > { %v1127_v56 = vadd.f32 %v1100_v19, %v1019_v14  ;;  %v1263_v63 = vadd.f32 %v2441_v44, %v1262_v13  ;;  %v1154_v12 = vpop.permute.xlu1 %1153 }
 0x355   : > { %v1195_v15 = vadd.f32 %v1154_v12, %v1113_v48 }
 0x356   : > { %v1333_v51 = vmax.f32 %v1263_v63, 0.0  ;;  %v1209_v45 = vadd.f32 %v1182_v9, %v1127_v56 }
 0x357   : > { %1282 = vmatmul.f32.gmra.mxu1 %v1195_v15 }
 0x358   : > { %1360 = vst [vmem:[%s2451_s28 + $0x28] sm:$0xff] %v1333_v51  ;;  %1324 = vmatmul.f32.gmra.mxu3 %v1209_v45 }
 0x359   : > { %v1304_v60 = vpop.f32.mrf.mxu3 }
 0x35a   : > { %v1305_v5 = vadd.f32 %v2441_v44, %v1304_v60 }
 0x35b   : > { %v966_v8 = vpop.permute.xlu0 %965 }
 0x35c   : > { %v1006_v17 = vadd.f32 %v966_v8, %v2283_v25  ;;  %v1347_v3 = vmax.f32 %v1305_v5, 0.0  ;;  %v1074_v58 = vpop.permute.xlu1 %1073 }
 0x35e   : > { %1374 = vst [vmem:[%s2451_s28 + $0x98] sm:$0xff] %v1347_v3  ;;  %v1114_v22 = vadd.f32 %v1074_v58, %v1006_v17 }
 0x360   : > { %v1196_v32 = vadd.f32 %v1156_v35, %v1114_v22 }
 0x362   : > { %1285 = vmatmul.f32.gmra.mxu1 %v1196_v32 }
 0x363   : > { %v1265_v31 = vpop.f32.mrf.mxu1 }
 0x364   : > { %v1266_v24 = vadd.f32 %v2441_v44, %v1265_v31 }
 0x366   : > { %v1334_v33 = vmax.f32 %v1266_v24, 0.0 }
 0x368   : > { %1361 = vst [vmem:[%s2451_s28 + $0x30] sm:$0xff] %v1334_v33 }
 0x36b   : > { %v1307_v26 = vpop.f32.mrf.mxu3 }
 0x36c   : > { %v1308_v18 = vadd.f32 %v2441_v44, %v1307_v26 }
 0x36e   : > { %v1348_v42 = vmax.f32 %v1308_v18, 0.0 }
 0x370   : > { %1375 = vst [vmem:[%s2451_s28 + $0xa0] sm:$0xff] %v1348_v42 }
 0x375   : > { %v1268_v25 = vpop.f32.mrf.mxu1 }
 0x376   : > { %v1269_v0 = vadd.f32 %v2441_v44, %v1268_v25 }
 0x378   : > { %v1335_v55 = vmax.f32 %v1269_v0, 0.0 }
 0x37a   : > { %1362 = vst [vmem:[%s2451_s28 + $0x38] sm:$0xff] %v1335_v55 }
 0x381   : > { %v1310_v4 = vpop.f32.mrf.mxu3 }
 0x382   : > { %v1311_v39 = vadd.f32 %v2441_v44, %v1310_v4 }
 0x384   : > { %v1349_v57 = vmax.f32 %v1311_v39, 0.0 }
 0x386   : > { %1376 = vst [vmem:[%s2451_s28 + $0xa8] sm:$0xff] %v1349_v57 }
 0x38b   : > { %v1271_v29 = vpop.f32.mrf.mxu1 }
 0x38c   : > { %v1272_v16 = vadd.f32 %v2441_v44, %v1271_v29 }
 0x38e   : > { %v1336_v30 = vmax.f32 %v1272_v16, 0.0 }
 0x390   : > { %1363 = vst [vmem:[%s2451_s28 + $0x40] sm:$0xff] %v1336_v30 }
 0x392   : > { %v1313_v46 = vpop.f32.mrf.mxu3 }
 0x393   : > { %v1314_v10 = vadd.f32 %v2441_v44, %v1313_v46 }
 0x395   : > { %v1350_v20 = vmax.f32 %v1314_v10, 0.0 }
 0x397   : > { %1377 = vst [vmem:[%s2451_s28 + $0xb0] sm:$0xff] %v1350_v20 }
 0x39c   : > { %v1274_v28 = vpop.f32.mrf.mxu1 }
 0x39d   : > { %v1275_v2 = vadd.f32 %v2441_v44, %v1274_v28 }
 0x39f   : > { %v1337_v59 = vmax.f32 %v1275_v2, 0.0 }
 0x3a1   : > { %1364 = vst [vmem:[%s2451_s28 + $0x48] sm:$0xff] %v1337_v59 }
 0x3a3   : > { %v1316_v40 = vpop.f32.mrf.mxu3 }
 0x3a4   : > { %v1317_v52 = vadd.f32 %v2441_v44, %v1316_v40 }
 0x3a6   : > { %v1351_v54 = vmax.f32 %v1317_v52, 0.0 }
 0x3a8   : > { %1378 = vst [vmem:[%s2451_s28 + $0xb8] sm:$0xff] %v1351_v54 }
 0x3ad   : > { %v1277_v1 = vpop.f32.mrf.mxu1 }
 0x3ae   : > { %v1278_v6 = vadd.f32 %v2441_v44, %v1277_v1 }
 0x3b0   : > { %v1338_v37 = vmax.f32 %v1278_v6, 0.0 }
 0x3b2   : > { %1365 = vst [vmem:[%s2451_s28 + $0x50] sm:$0xff] %v1338_v37 }
 0x3b9   : > { %v1319_v53 = vpop.f32.mrf.mxu3 }
 0x3ba   : > { %v1320_v23 = vadd.f32 %v2441_v44, %v1319_v53 }
 0x3bc   : > { %v1352_v43 = vmax.f32 %v1320_v23, 0.0 }
 0x3be   : > { %1379 = vst [vmem:[%s2451_s28 + $0xc0] sm:$0xff] %v1352_v43 }
 0x3c3   : > { %v1280_v11 = vpop.f32.mrf.mxu1 }
 0x3c4   : > { %v1281_v50 = vadd.f32 %v2441_v44, %v1280_v11 }
 0x3c6   : > { %v1339_v36 = vmax.f32 %v1281_v50, 0.0 }
 0x3c8   : > { %1366 = vst [vmem:[%s2451_s28 + $0x58] sm:$0xff] %v1339_v36 }
 0x3ca   : > { %v1322_v27 = vpop.f32.mrf.mxu3 }
 0x3cb   : > { %v1323_v61 = vadd.f32 %v2441_v44, %v1322_v27 }
 0x3cd   : > { %v1353_v41 = vmax.f32 %v1323_v61, 0.0 }
 0x3cf   : > { %1380 = vst [vmem:[%s2451_s28 + $0xc8] sm:$0xff] %v1353_v41 }
 0x3d4   : > { %v1283_v38 = vpop.f32.mrf.mxu1 }
 0x3d5   : > { %v1284_v62 = vadd.f32 %v2441_v44, %v1283_v38 }
 0x3d7   : > { %v1340_v7 = vmax.f32 %v1284_v62, 0.0 }
 0x3d9   : > { %1367 = vst [vmem:[%s2451_s28 + $0x60] sm:$0xff] %v1340_v7 }
 0x3db   : > { %v1325_v47 = vpop.f32.mrf.mxu3 }
 0x3dc   : > { %v1326_v21 = vadd.f32 %v2441_v44, %v1325_v47 }
 0x3de   : > { %v1354_v34 = vmax.f32 %v1326_v21, 0.0 }
 0x3df   : > { %v1286_v49 = vpop.f32.mrf.mxu1 }
 0x3e0   : > { %1381 = vst [vmem:[%s2451_s28 + $0xd0] sm:$0xff] %v1354_v34  ;;  %v1287_v14 = vadd.f32 %v2441_v44, %v1286_v49 }
 0x3e2   : > { %v1341_v19 = vmax.f32 %v1287_v14, 0.0 }
 0x3e4   : > { %1368 = vst [vmem:[%s2451_s28 + $0x68] sm:$0xff] %v1341_v19 }
 0x3e5 PF: > { %s14_s15 = sadd.s32 1, %s1505_s15  }
 0x3e6   : > { %p11_p4 = scmp.ge.s32.totalorder %s14_s15, 4  }
 0x3e8   :  { %13 = sbr.rel (!%p11_p4) target bundleno = 1 (0x1), region = 66 }

</bundles_post_ra>
